<compile_context>
chip_gen: v7x
topology: tpu7x:2x2x1
jax: 0.10.0
libtpu: 0.0.40
codegen_flags: <defaults>
</compile_context>

<pallas_src>
import functools

import jax
import jax.numpy as jnp
import numpy as np
from jax.experimental import pallas as pl
from jax.experimental.pallas import tpu as pltpu


# Branch fusion via block-diagonal weights only while both branches fit inside
# one MXU weight tile (128 = v5e MXU dim; conservative for v6e/v7x's 256x256).
_FUSE_MAX_CHANNELS = 128


# --------------------------------- Pallas kernel ---------------------------------
def _fsda_kernel(x_ref, w1_ref, b1_ref, s1t_ref, s2_ref, w2_ref, b2_ref,
                 out_ref, *, valid_p, pad_cols, nc, fused):
    """Fused FSDA step for one batch element.

    x_ref block: (1, 2C, Pp) -- rows [0:C) hold |X| (mag), rows [C:2C) hold
    angle(X) (pha).  Pp is the flattened spectrum padded to a multiple of 128;
    padded columns are zero.
    out_ref block: (1, 2C, Pp) -- rows [0:C) real, rows [C:2C) imag.
    """

    def conv1x1(w_ref, xv):
        if fused:
            # Both branches in one MXU pass via the block-diagonal weight.
            return jnp.dot(w_ref[...], xv, preferred_element_type=jnp.float32)
        # Above the MXU tile dim the zero off-diagonal blocks cost real tiles:
        # run the two branches as separate matmuls on the channel halves.
        top = jnp.dot(w_ref[0], xv[:nc, :], preferred_element_type=jnp.float32)
        bot = jnp.dot(w_ref[1], xv[nc:, :], preferred_element_type=jnp.float32)
        return jnp.concatenate([top, bot], axis=0)

    # ---- conv1 (1x1) + bias + LeakyReLU(0.1) ----
    # NOTE: x_ref is re-read later for the residual instead of keeping the
    # (2C, Pp) value live across both matmuls and the SE path (vreg pressure).
    y = conv1x1(w1_ref, x_ref[0]) + b1_ref[...]
    y = jnp.where(y >= 0, y, 0.1 * y)

    # ---- SE channel attention ----
    # Analytic padding correction: padded x columns are zero, so after conv1
    # they hold exactly b1 and after LeakyReLU exactly leaky(b1).  Subtracting
    # pad_cols * leaky(b1) from the full-row sum gives the true-spectrum mean
    # without a full-tile mask multiply.
    b1v = b1_ref[...]                                                   # (2C, 1)
    corr = float(pad_cols) * jnp.where(b1v >= 0, b1v, 0.1 * b1v)        # (2C, 1)
    pooled = (jnp.sum(y, axis=1, keepdims=True) - corr) * (1.0 / valid_p)

    # SE FC layers as VPU broadcast + reduce (tiny mat-vecs stay off the MXU).
    z = jnp.sum(s1t_ref[...] * pooled, axis=0, keepdims=True)   # (1, 2*hid)
    z = jnp.maximum(z, 0.0)                                      # ReLU
    z = jnp.sum(s2_ref[...] * z, axis=1, keepdims=True)          # (2C, 1)
    z = jax.nn.sigmoid(z)                                        # Sigmoid
    y = y * z                                                    # channel re-scale

    # ---- conv2 (1x1) + bias ----
    y = conv1x1(w2_ref, y) + b2_ref[...]

    # ---- residual + mag/phase -> real/imag, written per half (no concat) ----
    mag_o = x_ref[0, :nc, :] + y[:nc, :]
    pha_o = x_ref[0, nc:, :] + y[nc:, :]
    out_ref[0, :nc, :] = mag_o * jnp.cos(pha_o)
    out_ref[0, nc:, :] = mag_o * jnp.sin(pha_o)


# ------------------------------ parameter packing ------------------------------
def _block_diag(a, b):
    za = jnp.zeros((a.shape[0], b.shape[1]), a.dtype)
    zb = jnp.zeros((b.shape[0], a.shape[1]), a.dtype)
    top = jnp.concatenate([a, za], axis=1)
    bot = jnp.concatenate([zb, b], axis=1)
    return jnp.concatenate([top, bot], axis=0)


def _pack_params(params, fused):
    b1 = jnp.concatenate([params["b1m"], params["b1p"]], axis=0)   # (2C, 1)
    b2 = jnp.concatenate([params["b2m"], params["b2p"]], axis=0)   # (2C, 1)
    s1t = _block_diag(params["s1m"], params["s1p"]).T              # (2C, 2*hid)
    s2 = _block_diag(params["s2m"], params["s2p"])                 # (2C, 2*hid)
    if fused:
        w1 = _block_diag(params["w1m"], params["w1p"])             # (2C, 2C)
        w2 = _block_diag(params["w2m"], params["w2p"])             # (2C, 2C)
    else:
        w1 = jnp.stack([params["w1m"], params["w1p"]], axis=0)     # (2, C, C)
        w2 = jnp.stack([params["w2m"], params["w2p"]], axis=0)     # (2, C, C)
    return w1, b1, s1t, s2, w2, b2


# --------------------------------- pallas_call wrapper ---------------------------------
def fsda_pallas(x_cat, params, *, valid_p, nc):
    b, c2, pp = x_cat.shape
    fused = c2 <= _FUSE_MAX_CHANNELS
    w1, b1, s1t, s2, w2, b2 = _pack_params(params, fused)
    hid2 = s1t.shape[1]

    vec_spec = lambda shape: pl.BlockSpec(shape, lambda i: (0, 0))
    if fused:
        w1_spec = vec_spec((c2, c2))
        w2_spec = vec_spec((c2, c2))
    else:
        w1_spec = pl.BlockSpec((2, nc, nc), lambda i: (0, 0, 0))
        w2_spec = pl.BlockSpec((2, nc, nc), lambda i: (0, 0, 0))
    batched = pl.BlockSpec((1, c2, pp), lambda i: (i, 0, 0))

    kernel = functools.partial(_fsda_kernel, valid_p=int(valid_p),
                               pad_cols=int(pp - valid_p), nc=int(nc),
                               fused=fused)

    # ---- VMEM budget: real need + per-generation ceiling ----
    weight_bytes = int(w1.size + b1.size + s1t.size + s2.size + w2.size
                       + b2.size) * 4
    block_bytes = c2 * pp * 4
    # 2x in-block + 2x out-block (double-buffered) + ~3 live tile temps + weights.
    vmem_need = 7 * block_bytes + weight_bytes
    try:
        vmem_cap = int(pltpu.get_tpu_info().vmem_capacity_bytes)
    except Exception:
        vmem_cap = 64 * 1024 * 1024          # assume the tightest part (v7x)
    vmem_ceiling = (vmem_cap * 3) // 4       # ~96 MiB v5e/v6e, ~48 MiB v7x
    vmem_limit = int(min(max(2 * vmem_need, 32 * 1024 * 1024), vmem_ceiling))

    # ---- advisory cost estimate ----
    useful_cc = (c2 * c2) if fused else (2 * nc * nc)
    flops = 2 * 2 * b * useful_cc * pp            # two 1x1 convs, 2 flops/MAC
    transcendentals = b * c2 * pp                 # one sin or cos per output element
    bytes_accessed = 2 * b * c2 * pp * 4 + weight_bytes

    out = pl.pallas_call(
        kernel,
        out_shape=jax.ShapeDtypeStruct((b, c2, pp), jnp.float32),
        grid=(b,),
        in_specs=[batched,
                  w1_spec, vec_spec((c2, 1)),
                  vec_spec((c2, hid2)), vec_spec((c2, hid2)),
                  w2_spec, vec_spec((c2, 1))],
        out_specs=batched,
        compiler_params=pltpu.CompilerParams(
            dimension_semantics=("parallel",),
            vmem_limit_bytes=vmem_limit),
        cost_estimate=pl.CostEstimate(flops=int(flops),
                                      transcendentals=int(transcendentals),
                                      bytes_accessed=int(bytes_accessed)),
    )(x_cat, w1, b1, s1t, s2, w2, b2)
    return out


def ffdf_forward(x, params):
    """Frequency_Feature_Dynamic_Fusion.forward for NCHW float32 input."""
    b, c, h, w = x.shape
    xf = jnp.fft.rfft2(x, norm="backward")                 # (b, c, h, w//2+1) complex
    wf = xf.shape[-1]
    p = h * wf
    mag = jnp.abs(xf).astype(jnp.float32).reshape(b, c, p)
    pha = jnp.angle(xf).astype(jnp.float32).reshape(b, c, p)
    x_cat = jnp.concatenate([mag, pha], axis=1)            # (b, 2c, p)

    pp = ((p + 127) // 128) * 128                          # lane-dense padding
    if pp != p:
        x_cat = jnp.pad(x_cat, ((0, 0), (0, 0), (0, pp - p)))

    out = fsda_pallas(x_cat, params, valid_p=p, nc=c)      # (b, 2c, pp)
    real = out[:, :c, :p].reshape(b, c, h, wf)
    imag = out[:, c:, :p].reshape(b, c, h, wf)
    x_freq = real + 1j * imag
    return jnp.fft.irfft2(x_freq, s=(h, w), norm="backward")


# ----------------------- pure-JAX reference (for checking) -----------------------
def _branch_ref(x, w1, b1, s1, s2, w2, b2):
    # x: (b, c, P)
    y = jnp.einsum("oc,bcp->bop", w1, x) + b1[None, :, :]
    y = jnp.where(y >= 0, y, 0.1 * y)
    pooled = jnp.mean(y, axis=2)                      # (b, c)
    z = jnp.maximum(pooled @ s1.T, 0.0)               # (b, hid)
    z = jax.nn.sigmoid(z @ s2.T)                      # (b, c)
    y = y * z[:, :, None]
    y = jnp.einsum("oc,bcp->bop", w2, y) + b2[None, :, :]
    return x + y


def ffdf_reference(x, params):
    b, c, h, w = x.shape
    xf = jnp.fft.rfft2(x, norm="backward")
    wf = xf.shape[-1]
    p = h * wf
    mag = jnp.abs(xf).astype(jnp.float32).reshape(b, c, p)
    pha = jnp.angle(xf).astype(jnp.float32).reshape(b, c, p)
    mag_o = _branch_ref(mag, params["w1m"], params["b1m"], params["s1m"],
                        params["s2m"], params["w2m"], params["b2m"])
    pha_o = _branch_ref(pha, params["w1p"], params["b1p"], params["s1p"],
                        params["s2p"], params["w2p"], params["b2p"])
    real = mag_o * jnp.cos(pha_o)
    imag = mag_o * jnp.sin(pha_o)
    x_freq = (real + 1j * imag).reshape(b, c, h, wf)
    return jnp.fft.irfft2(x_freq, s=(h, w), norm="backward")


# ----------------------------- parameter construction ----------------------------
def init_params(key, c, reduction=16):
    hid = max(c // reduction, 1)
    ks = jax.random.split(key, 12)
    rnd = lambda k, shape, s: s * jax.random.normal(k, shape, jnp.float32)
    params = {}
    i = 0
    for br in ("m", "p"):
        params[f"w1{br}"] = rnd(ks[i], (c, c), 0.1); i += 1        # Conv2d weight (out,in)
        params[f"b1{br}"] = rnd(ks[i], (c, 1), 0.1); i += 1        # Conv2d bias
        params[f"s1{br}"] = rnd(ks[i], (hid, c), 0.2); i += 1      # SE Linear 1 (no bias)
        params[f"s2{br}"] = rnd(ks[i], (c, hid), 0.2); i += 1      # SE Linear 2 (no bias)
        params[f"w2{br}"] = rnd(ks[i], (c, c), 0.1); i += 1        # Conv2d weight (out,in)
        params[f"b2{br}"] = rnd(ks[i], (c, 1), 0.1); i += 1        # Conv2d bias
    return params


if __name__ == "__main__":
    key = jax.random.PRNGKey(0)
    kx, kp = jax.random.split(key)

    b, c, h, w = 2, 32, 16, 16     # nc=32 so that SE reduction (16) gives hidden=2
    x = jax.random.normal(kx, (b, c, h, w), jnp.float32)
    params = init_params(kp, c)

    out = jax.block_until_ready(ffdf_forward(x, params))
    ref = jax.block_until_ready(ffdf_reference(x, params))

    assert out.shape == (b, c, h, w), out.shape
    np.testing.assert_allclose(np.asarray(out), np.asarray(ref),
                               rtol=2e-3, atol=2e-3)
    print("KERNEL_OK")
</pallas_src>

<mosaic_0001>
module attributes {stable_mosaic.version = 11 : i64} {
  func.func @_fsda_kernel(%arg0: i32, %arg1: memref<1x64x256xf32, #tpu.memory_space<vmem>>, %arg2: memref<64x64xf32, #tpu.memory_space<vmem>>, %arg3: memref<64x1xf32, #tpu.memory_space<vmem>>, %arg4: memref<64x4xf32, #tpu.memory_space<vmem>>, %arg5: memref<64x4xf32, #tpu.memory_space<vmem>>, %arg6: memref<64x64xf32, #tpu.memory_space<vmem>>, %arg7: memref<64x1xf32, #tpu.memory_space<vmem>>, %arg8: memref<1x64x256xf32, #tpu.memory_space<vmem>>) attributes {dimension_semantics = [#tpu.dimension_semantics<parallel>], iteration_bounds = array<i64: 2>, scalar_prefetch = 0 : i64, scratch_operands = 0 : i64, tpu.core_type = #tpu.core_type<tc>, window_params = [{transform_indices = @transform_0, window_bounds = array<i64: 1, 64, 256>}, {pipeline_mode = #tpu.pipeline_mode<synchronous>, transform_indices = @transform_1, window_bounds = array<i64: 64, 64>}, {pipeline_mode = #tpu.pipeline_mode<synchronous>, transform_indices = @transform_2, window_bounds = array<i64: 64, 1>}, {pipeline_mode = #tpu.pipeline_mode<synchronous>, transform_indices = @transform_3, window_bounds = array<i64: 64, 4>}, {pipeline_mode = #tpu.pipeline_mode<synchronous>, transform_indices = @transform_4, window_bounds = array<i64: 64, 4>}, {pipeline_mode = #tpu.pipeline_mode<synchronous>, transform_indices = @transform_5, window_bounds = array<i64: 64, 64>}, {pipeline_mode = #tpu.pipeline_mode<synchronous>, transform_indices = @transform_6, window_bounds = array<i64: 64, 1>}, {transform_indices = @transform_7, window_bounds = array<i64: 1, 64, 256>}]} {
    %c0 = arith.constant 0 : index
    %c0_0 = arith.constant 0 : index
    %c0_1 = arith.constant 0 : index
    %0 = vector.load %arg1[%c0, %c0_0, %c0_1] : memref<1x64x256xf32, #tpu.memory_space<vmem>>, vector<1x64x256xf32>
    %1 = vector.shape_cast %0 : vector<1x64x256xf32> to vector<64x256xf32>
    %c0_2 = arith.constant 0 : index
    %c0_3 = arith.constant 0 : index
    %2 = vector.load %arg2[%c0_2, %c0_3] : memref<64x64xf32, #tpu.memory_space<vmem>>, vector<64x64xf32>
    %cst = arith.constant dense<0.000000e+00> : vector<64x256xf32>
    %3 = tpu.matmul %2, %1, %cst {dimension_numbers = #tpu.dot_dimension_numbers<[1], [0], [0], [1], [0, 0, 1, 1], [], []>} : vector<64x64xf32>, vector<64x256xf32>, vector<64x256xf32> -> vector<64x256xf32>
    %c0_4 = arith.constant 0 : index
    %c0_5 = arith.constant 0 : index
    %4 = vector.load %arg3[%c0_4, %c0_5] : memref<64x1xf32, #tpu.memory_space<vmem>>, vector<64x1xf32>
    %5 = vector.broadcast %4 : vector<64x1xf32> to vector<64x256xf32>
    %6 = arith.addf %3, %5 : vector<64x256xf32>
    %cst_6 = arith.constant 0.000000e+00 : f32
    %7 = vector.broadcast %cst_6 : f32 to vector<64x256xf32>
    %8 = arith.cmpf oge, %6, %7 : vector<64x256xf32>
    %cst_7 = arith.constant 1.000000e-01 : f32
    %9 = vector.broadcast %cst_7 : f32 to vector<64x256xf32>
    %10 = arith.mulf %9, %6 : vector<64x256xf32>
    %11 = arith.select %8, %6, %10 : vector<64x256xi1>, vector<64x256xf32>
    %c0_8 = arith.constant 0 : index
    %c0_9 = arith.constant 0 : index
    %12 = vector.load %arg3[%c0_8, %c0_9] : memref<64x1xf32, #tpu.memory_space<vmem>>, vector<64x1xf32>
    %cst_10 = arith.constant 0.000000e+00 : f32
    %13 = vector.broadcast %cst_10 : f32 to vector<64x1xf32>
    %14 = arith.cmpf oge, %12, %13 : vector<64x1xf32>
    %cst_11 = arith.constant 1.000000e-01 : f32
    %15 = vector.broadcast %cst_11 : f32 to vector<64x1xf32>
    %16 = arith.mulf %15, %12 : vector<64x1xf32>
    %17 = arith.select %14, %12, %16 : vector<64x1xi1>, vector<64x1xf32>
    %cst_12 = arith.constant 1.120000e+02 : f32
    %18 = vector.broadcast %cst_12 : f32 to vector<64x1xf32>
    %19 = arith.mulf %18, %17 : vector<64x1xf32>
    %cst_13 = arith.constant dense<0.000000e+00> : vector<64xf32>
    %20 = vector.multi_reduction <add>, %11, %cst_13 [1] : vector<64x256xf32> to vector<64xf32>
    %21 = vector.shape_cast %20 : vector<64xf32> to vector<64x1xf32>
    %22 = arith.subf %21, %19 : vector<64x1xf32>
    %cst_14 = arith.constant 0.0069444445 : f32
    %23 = vector.broadcast %cst_14 : f32 to vector<64x1xf32>
    %24 = arith.mulf %22, %23 : vector<64x1xf32>
    %c0_15 = arith.constant 0 : index
    %c0_16 = arith.constant 0 : index
    %25 = vector.load %arg4[%c0_15, %c0_16] : memref<64x4xf32, #tpu.memory_space<vmem>>, vector<64x4xf32>
    %26 = vector.broadcast %24 : vector<64x1xf32> to vector<64x4xf32>
    %27 = arith.mulf %25, %26 : vector<64x4xf32>
    %cst_17 = arith.constant dense<0.000000e+00> : vector<4xf32>
    %28 = vector.multi_reduction <add>, %27, %cst_17 [0] : vector<64x4xf32> to vector<4xf32>
    %29 = vector.shape_cast %28 : vector<4xf32> to vector<1x4xf32>
    %cst_18 = arith.constant 0.000000e+00 : f32
    %30 = vector.broadcast %cst_18 : f32 to vector<1x4xf32>
    %31 = arith.maximumf %29, %30 : vector<1x4xf32>
    %c0_19 = arith.constant 0 : index
    %c0_20 = arith.constant 0 : index
    %32 = vector.load %arg5[%c0_19, %c0_20] : memref<64x4xf32, #tpu.memory_space<vmem>>, vector<64x4xf32>
    %33 = vector.broadcast %31 : vector<1x4xf32> to vector<64x4xf32>
    %34 = arith.mulf %32, %33 : vector<64x4xf32>
    %cst_21 = arith.constant dense<0.000000e+00> : vector<64xf32>
    %35 = vector.multi_reduction <add>, %34, %cst_21 [1] : vector<64x4xf32> to vector<64xf32>
    %36 = vector.shape_cast %35 : vector<64xf32> to vector<64x1xf32>
    %37 = arith.negf %36 : vector<64x1xf32>
    %38 = math.exp %37 : vector<64x1xf32>
    %cst_22 = arith.constant 1.000000e+00 : f32
    %39 = vector.broadcast %cst_22 : f32 to vector<64x1xf32>
    %40 = arith.addf %39, %38 : vector<64x1xf32>
    %41 = arith.divf %39, %40 : vector<64x1xf32>
    %42 = vector.broadcast %41 : vector<64x1xf32> to vector<64x256xf32>
    %43 = arith.mulf %11, %42 : vector<64x256xf32>
    %c0_23 = arith.constant 0 : index
    %c0_24 = arith.constant 0 : index
    %44 = vector.load %arg6[%c0_23, %c0_24] : memref<64x64xf32, #tpu.memory_space<vmem>>, vector<64x64xf32>
    %cst_25 = arith.constant dense<0.000000e+00> : vector<64x256xf32>
    %45 = tpu.matmul %44, %43, %cst_25 {dimension_numbers = #tpu.dot_dimension_numbers<[1], [0], [0], [1], [0, 0, 1, 1], [], []>} : vector<64x64xf32>, vector<64x256xf32>, vector<64x256xf32> -> vector<64x256xf32>
    %c0_26 = arith.constant 0 : index
    %c0_27 = arith.constant 0 : index
    %46 = vector.load %arg7[%c0_26, %c0_27] : memref<64x1xf32, #tpu.memory_space<vmem>>, vector<64x1xf32>
    %47 = vector.broadcast %46 : vector<64x1xf32> to vector<64x256xf32>
    %48 = arith.addf %45, %47 : vector<64x256xf32>
    %c0_28 = arith.constant 0 : index
    %c0_29 = arith.constant 0 : index
    %c0_30 = arith.constant 0 : index
    %49 = vector.load %arg1[%c0_28, %c0_29, %c0_30] : memref<1x64x256xf32, #tpu.memory_space<vmem>>, vector<1x32x256xf32>
    %50 = vector.shape_cast %49 : vector<1x32x256xf32> to vector<32x256xf32>
    %51 = vector.extract_strided_slice %48 {offsets = [0, 0], sizes = [32, 256], strides = [1, 1]} : vector<64x256xf32> to vector<32x256xf32>
    %52 = arith.addf %50, %51 : vector<32x256xf32>
    %c0_31 = arith.constant 0 : index
    %c32 = arith.constant 32 : index
    %c0_32 = arith.constant 0 : index
    %53 = vector.load %arg1[%c0_31, %c32, %c0_32] : memref<1x64x256xf32, #tpu.memory_space<vmem>>, vector<1x32x256xf32>
    %54 = vector.shape_cast %53 : vector<1x32x256xf32> to vector<32x256xf32>
    %55 = vector.extract_strided_slice %48 {offsets = [32, 0], sizes = [32, 256], strides = [1, 1]} : vector<64x256xf32> to vector<32x256xf32>
    %56 = arith.addf %54, %55 : vector<32x256xf32>
    %57 = math.cos %56 : vector<32x256xf32>
    %58 = arith.mulf %52, %57 : vector<32x256xf32>
    %c0_33 = arith.constant 0 : index
    %c0_34 = arith.constant 0 : index
    %c0_35 = arith.constant 0 : index
    %59 = vector.load %arg8[%c0_33, %c0_34, %c0_35] : memref<1x64x256xf32, #tpu.memory_space<vmem>>, vector<1x32x256xf32>
    %60 = vector.shape_cast %59 : vector<1x32x256xf32> to vector<32x256xf32>
    %61 = vector.shape_cast %58 : vector<32x256xf32> to vector<1x32x256xf32>
    tpu.vector_store %arg8[%c0_33, %c0_34, %c0_35], %61 {strides = array<i32>} : memref<1x64x256xf32, #tpu.memory_space<vmem>>, vector<1x32x256xf32>,
    %62 = math.sin %56 : vector<32x256xf32>
    %63 = arith.mulf %52, %62 : vector<32x256xf32>
    %c0_36 = arith.constant 0 : index
    %c32_37 = arith.constant 32 : index
    %c0_38 = arith.constant 0 : index
    %64 = vector.load %arg8[%c0_36, %c32_37, %c0_38] : memref<1x64x256xf32, #tpu.memory_space<vmem>>, vector<1x32x256xf32>
    %65 = vector.shape_cast %64 : vector<1x32x256xf32> to vector<32x256xf32>
    %66 = vector.shape_cast %63 : vector<32x256xf32> to vector<1x32x256xf32>
    tpu.vector_store %arg8[%c0_36, %c32_37, %c0_38], %66 {strides = array<i32>} : memref<1x64x256xf32, #tpu.memory_space<vmem>>, vector<1x32x256xf32>,
    return
  }
  func.func @transform_0(%arg0: i32) -> (i32, i32, i32) {
    %c0_i32 = arith.constant 0 : i32
    %c0_i32_0 = arith.constant 0 : i32
    %c0_i32_1 = arith.constant 0 : i32
    return %arg0, %c0_i32, %c0_i32_0 : i32, i32, i32
  }
  func.func @transform_1(%arg0: i32) -> (i32, i32) {
    %c0_i32 = arith.constant 0 : i32
    %c0_i32_0 = arith.constant 0 : i32
    %c0_i32_1 = arith.constant 0 : i32
    return %c0_i32, %c0_i32_0 : i32, i32
  }
  func.func @transform_2(%arg0: i32) -> (i32, i32) {
    %c0_i32 = arith.constant 0 : i32
    %c0_i32_0 = arith.constant 0 : i32
    %c0_i32_1 = arith.constant 0 : i32
    return %c0_i32, %c0_i32_0 : i32, i32
  }
  func.func @transform_3(%arg0: i32) -> (i32, i32) {
    %c0_i32 = arith.constant 0 : i32
    %c0_i32_0 = arith.constant 0 : i32
    %c0_i32_1 = arith.constant 0 : i32
    return %c0_i32, %c0_i32_0 : i32, i32
  }
  func.func @transform_4(%arg0: i32) -> (i32, i32) {
    %c0_i32 = arith.constant 0 : i32
    %c0_i32_0 = arith.constant 0 : i32
    %c0_i32_1 = arith.constant 0 : i32
    return %c0_i32, %c0_i32_0 : i32, i32
  }
  func.func @transform_5(%arg0: i32) -> (i32, i32) {
    %c0_i32 = arith.constant 0 : i32
    %c0_i32_0 = arith.constant 0 : i32
    %c0_i32_1 = arith.constant 0 : i32
    return %c0_i32, %c0_i32_0 : i32, i32
  }
  func.func @transform_6(%arg0: i32) -> (i32, i32) {
    %c0_i32 = arith.constant 0 : i32
    %c0_i32_0 = arith.constant 0 : i32
    %c0_i32_1 = arith.constant 0 : i32
    return %c0_i32, %c0_i32_0 : i32, i32
  }
  func.func @transform_7(%arg0: i32) -> (i32, i32, i32) {
    %c0_i32 = arith.constant 0 : i32
    %c0_i32_0 = arith.constant 0 : i32
    %c0_i32_1 = arith.constant 0 : i32
    return %arg0, %c0_i32, %c0_i32_0 : i32, i32, i32
  }
}

</mosaic_0001>

<bundles_post_ra>
// kernel: tpu_custom_call.1
= control target key start
LH: loop header
LB: loop body
LE: loop exit
PB: predicated region body
PF: predicated region fallthrough
CT: control target
= control target key end

     0   :  { %12 = vsyncpa [#allocation3], 0  ;;  %s4670_s0 = inlined_call_operand.vmem [shape: f32[2,64,256], index: 0, kind: input, shape index: {}]   ;;  %s4671_s1 = inlined_call_operand.hbm [shape: f32[64,64], index: 1, kind: input, shape index: {}]   ;;  %s4672_s2 = inlined_call_operand.vmem [shape: f32[64,1], index: 2, kind: input, shape index: {}]   ;;  %s4673_s3 = inlined_call_operand.vmem [shape: f32[64,4], index: 3, kind: input, shape index: {}]   ;;  %s4674_s4 = inlined_call_operand.vmem [shape: f32[64,4], index: 4, kind: input, shape index: {}]   ;;  %s4675_s5 = inlined_call_operand.hbm [shape: f32[64,64], index: 5, kind: input, shape index: {}]   ;;  %s4676_s6 = inlined_call_operand.vmem [shape: f32[64,1], index: 6, kind: input, shape index: {}]   ;;  %s4677_s7 = inlined_call_operand.hbm [shape: f32[2,64,256], index: 7, kind: output, shape index: {}]  }
   0x1   :  { %13 = vsyncpa [#allocation6], 0 }
   0x2   :  { %14 = vsyncpa [#allocation4], 0 }
   0x3   :  { %16 = vsyncpa [#allocation4 + $0x1], 0  ;;  %s3327_s24 = smov 0   ;;  %s3329_s25 = smov 0  }
   0x4   :  { %s3331_s26 = smov 0   ;;  %s3333_s27 = smov 0  }
   0x5 LB: > { %s3348_s28 = sadd.s32 4294967295, %s3270_s27   ;;  %s2823_s29 = sadd.s32 4294967294, %s3270_s27   ;;  %s3270_s27 = sphi %s3333_s27, %s4709_s27   ;;  %s3266_s26 = sphi %s3331_s26, %s4708_s26   ;;  %s3262_s25 = sphi %s3329_s25, %s4707_s25   ;;  %s3258_s24 = sphi %s3327_s24, %s4706_s24  }
   0x6   : > { %s3352_s30 = sadd.s32 1, %s3270_s27   ;;  %s181_s8 = sadd.s32 1, %s3266_s26 }
   0x7   : > { %s178_s9 = ssub.s32 %s3270_s27, %s3352_s30  ;;  %p191_p0 = scmp.ne.s32.totalorder %s3266_s26, %s3262_s25 }
   0x8   : > { %p179_p1 = scmp.eq.s32.totalorder %s178_s9, 0  ;;  %p192_p2 = scmp.eq.s32.totalorder %s3348_s28, 1 }
   0x9   : > { %p197_p3 = scmp.ne.s32.totalorder %s3262_s25, %s3258_s24  ;;  %p198_p4 = scmp.eq.s32.totalorder %s2823_s29, 1 }
   0xa   : > { %s3363_s10 = scalar_select %p179_p1, %s3266_s26, %s181_s8  }
   0xb   : > { %p3365_p5 = por %p192_p2, %p191_p0  ;;  %p3369_p6 = por %p198_p4, %p197_p3 }
   0xc   : > { %4681 = sst [smem:[#allocation11_spill]] %s3363_s10  ;;  %p2824_p7 = scmp.ge.s32.totalorder %s3270_s27, 1 }
   0xd   : > { %s4682_s11 = scalar_select %p3365_p5, 1, 0 }
   0xe   : > { %s4683_s12 = scalar_select %p3369_p6, 1, 0 }
   0xf   : > { %p205_p8 = scmp.lt.s32.totalorder %s3270_s27, 3  ;;  %p4678_p9 = scmp.eq.s32.totalorder %s3348_s28, 0 }
  0x10   : > { %s3272_s14 = smov [#allocation2]   ;;  %s3273_s17 = smov [#allocation5]  }
  0x11   : > { %p3376_p10 = pnand %p2824_p7, %p205_p8  ;;  %s217_s15 = sshll.u32 %s3272_s14, 4  ;;  %s218_s15 = int_to_ptr.vmem [resolvable:$true] %s217_s15 }
  0x12   : > { %s239_s18 = sshll.u32 %s3273_s17, 4  ;;  %s3144_s21 = scalar_lea.hbm %s4671_s1, 1024  ;;  %s3388_s18 = int_to_ptr.vmem [resolvable:$true] %s239_s18 }
  0x13   : > { %s4684_s13 = scalar_select %p3376_p10, 1, 0 }
  0x14   : > { %p3003_p11 = pneg %p3376_p10  ;;  %p3145_p13 = scmp.ne.s32.totalorder %s4671_s1, %s3144_s21 }
  0x15   : > { %p3151_p3 = scmp.lt.u32.totalorder %s3144_s21, %s4671_s1 }
  0x16   : > { %p3384_p12 = pnand %p4678_p9, %p3003_p11 }
  0x18   : > { %p3146_p0 = pneg %p3384_p12 }
  0x1a   : > { %p3147_p1 = pnand %p3146_p0, %p3145_p13 }
  0x1c   : > { %p3148_p2 = pneg %p3147_p1 }
  0x1e   : > { %p3153_p4 = pnand %p3151_p3, %p3148_p2 }
  0x20   : > { %3156 = shalt.err (!%p3153_p4)
}
  0x21   : > { %s3157_s9 = scalar_lea.vmem %s218_s15, 1024  ;;  %p3165_p9 = scmp.lt.s32.totalorder %s218_s15, %s218_s15 }
  0x22   : > { %p3158_p7 = scmp.ne.s32.totalorder %s218_s15, %s3157_s9  ;;  %p3166_p6 = scmp.lt.s32.totalorder %s3157_s9, %s3157_s9 }
  0x24   : > { %p3160_p8 = pnand %p3158_p7, %p3146_p0  ;;  %p3167_p5 = por %p3166_p6, %p3165_p9 }
  0x26   : > { %p3161_p11 = pneg %p3160_p8 }
  0x28   : > { %p3168_p10 = pnand %p3167_p5, %p3161_p11 }
  0x2a   : > { %3171 = shalt.err (!%p3168_p10)
}
  0x2b   : > { %s3274_s14 = smov 128   ;;  %s3275_s17 = smov 8  }
  0x2c   : > { %3006 = dma.hbm_to_vmem [thread:$0]  (!%p3384_p12), %s4671_s1, 1024, %s218_s15, [#allocation3], %s3274_s14, %s3274_s14, %s3275_s17  }
  0x2d   : > { %s3172_s23 = scalar_lea.hbm %s4675_s5, 1024 }
  0x2e   : > { %p3173_p13 = scmp.ne.s32.totalorder %s4675_s5, %s3172_s23  ;;  %p3179_p9 = scmp.lt.u32.totalorder %s3172_s23, %s4675_s5 }
  0x30   : > { %p3175_p5 = pnand %p3173_p13, %p3146_p0 }
  0x32   : > { %p3176_p6 = pneg %p3175_p5 }
  0x34   : > { %p3181_p10 = pnand %p3179_p9, %p3176_p6 }
  0x36   : > { %3184 = shalt.err (!%p3181_p10)
}
  0x37   : > { %s3185_s15 = scalar_lea.vmem %s3388_s18, 1024  ;;  %p3193_p4 = scmp.lt.s32.totalorder %s3388_s18, %s3388_s18 }
  0x38   : > { %p3186_p1 = scmp.ne.s32.totalorder %s3388_s18, %s3185_s15  ;;  %p3194_p7 = scmp.lt.s32.totalorder %s3185_s15, %s3185_s15 }
  0x3a   : > { %p3188_p2 = pnand %p3186_p1, %p3146_p0  ;;  %p3195_p8 = por %p3194_p7, %p3193_p4 }
  0x3c   : > { %p3189_p3 = pneg %p3188_p2 }
  0x3e   : > { %p3196_p11 = pnand %p3195_p8, %p3189_p3 }
  0x40   : > { %3199 = shalt.err (!%p3196_p11)
}
  0x41   : > { %3009 = dma.hbm_to_vmem [thread:$0]  (!%p3384_p12), %s4675_s5, 1024, %s3388_s18, [#allocation6], %s3274_s14, %s3274_s14, %s3275_s17  }
  0x42   : > { %p4686_p13 = scmp.ne.s32.totalorder %s4684_s13, 0 }
  0x43   : > { %p4687_p5 = scmp.eq.s32.totalorder (!%p4686_p13), %s3348_s28, 0 }
  0x44   : > { %266 = sbr.rel (%p4686_p13) target bundleno = 1346 (0x542), region = 48 }
  0x4b   : > { %3245 = dma.done.wait (%p4687_p5), [#allocation3], 1024   ;;  %p4688_p0 = pmov %p4687_p5 }
  0x4d   : > { %3247 = vsyncadd (%p4688_p0), [#allocation3], 4294966272  ;;  %p4689_p6 = pmov %p4688_p0 }
  0x4e   : > { %p4690_p9 = pmov %p4688_p0 }
  0x4f   : > { %3249 = dma.done.wait (%p4689_p6), [#allocation6], 1024  }
  0x50   : > { %3251 = vsyncadd (%p4690_p9), [#allocation6], 4294966272  ;;  %p302_p10 = scmp.lt.s32.totalorder %s3348_s28, 1  ;;  %v3276_v0 = vmov 0.0   ;;  %v3277_v1 = vmov 0   ;;  %v3482_v22 = vld [vmem:[%s4672_s2] sm:$0xff] }
  0x51   : > { %468 = vmatprep.mubr.f32.mxu0 %v3276_v0  ;;  %3065 = vset.pattern.permute.xlu0 %v3277_v1  ;;  %v3487_v23 = vld [vmem:[%s4672_s2 + $0x10] sm:$0xff]  ;;  %v3495_v27 = vld [vmem:[%s4672_s2 + $0x8] sm:$0xff]  ;;  %v3501_v28 = vld [vmem:[%s4672_s2 + $0x18] sm:$0xff]  ;;  %vm379_vm0 = vcmask 523264   ;;  %s299_s10 = sand.u32 1, %s3262_s25   ;;  %p4703_p1 = scmp.ne.s32.totalorder %s4682_s11, 0 }
  0x52   : > { %s303_s13 = scalar_select %p302_p10, %s3348_s28, 1  ;;  %3066 = vset.pattern.permute.xlu1 %v3277_v1  ;;  %964 = vmatprep.mubr.f32.mxu1 %v3276_v0  ;;  %v3508_v30 = vld [vmem:[%s4672_s2 + $0x20] sm:$0xff]  ;;  %v3513_v31 = vld [vmem:[%s4672_s2 + $0x28] sm:$0xff]  ;;  %v3520_v33 = vld [vmem:[%s4672_s2 + $0x30] sm:$0xff] }
  0x53   : > { %341 = vperm.xlu0 %3065, %v3482_v22   ;;  %351 = vperm.xlu1 %3066, %v3487_v23   ;;  %v323_v32 = vld [vmem:[#allocation2] sm:$0xff]  ;;  %v3526_v34 = vld [vmem:[%s4672_s2 + $0x38] sm:$0xff]  ;;  %v324_v35 = vld [vmem:[#allocation2 + $0x8] sm:$0xff]  ;;  %s4053_s19 = sshll.u32 %s299_s10, 7  ;;  %s3284_s22 = smov [#allocation7]  }
  0x54   : > { %s2927_s16 = sshll.u32 %s303_s13, 7  ;;  %v325_v36 = vld [vmem:[#allocation2 + $0x10] sm:$0xff]  ;;  %v326_v37 = vld [vmem:[#allocation2 + $0x18] sm:$0xff]  ;;  %v327_v38 = vld [vmem:[#allocation2 + $0x20] sm:$0xff]  ;;  %s4096_s13 = scalar_lea.vmem [#allocation7], %s4053_s19 }
  0x55   : > { %s3454_s17 = scalar_lea.vmem %s4670_s0, %s2927_s16  ;;  %v328_v39 = vld [vmem:[#allocation2 + $0x28] sm:$0xff]  ;;  %v329_v40 = vld [vmem:[#allocation2 + $0x30] sm:$0xff]  ;;  %v330_v41 = vld [vmem:[#allocation2 + $0x38] sm:$0xff]  ;;  %s2928_s16 = sshll.u32 %s3348_s28, 11 }
  0x56   : > { %v308_v2 = vld [vmem:[%s3454_s17 + $0x8] sm:$0xff]  ;;  %v310_v3 = vld [vmem:[%s3454_s17 + $0x18] sm:$0xff]  ;;  %v307_v4 = vld [vmem:[%s3454_s17] sm:$0xff]  ;;  %s2739_s18 = sshll.u32 %s4096_s13, 4  ;;  %s4621_s28 = scalar_lea.hbm %s4677_s7, %s2928_s16  ;;  %s4623_s18 = int_to_ptr.vmem [resolvable:$true] %s2739_s18 }
  0x57   : > { %v2929_v5 = vpack.c.bf16 %v310_v3, %v308_v2  ;;  %v309_v6 = vld [vmem:[%s3454_s17 + $0x10] sm:$0xff]  ;;  %v312_v7 = vld [vmem:[%s3454_s17 + $0x28] sm:$0xff]  ;;  %v314_v8 = vld [vmem:[%s3454_s17 + $0x38] sm:$0xff]  ;;  %346 = vperm.xlu0 %3065, %v3495_v27   ;;  %356 = vperm.xlu1 %3066, %v3501_v28   ;;  %s3200_s21 = scalar_lea.vmem %s4623_s18, 2048  ;;  %s3204_s23 = sshll.u32 %s3284_s22, 4  ;;  %s3205_s23 = int_to_ptr.vmem [resolvable:$false] %s3204_s23 }
  0x58   : > { %v2931_v9 = vpack.c.bf16 %v309_v6, %v307_v4  ;;  %v2933_v10 = vpack.c.bf16 %v314_v8, %v312_v7  ;;  %v311_v11 = vld [vmem:[%s3454_s17 + $0x20] sm:$0xff]  ;;  %v313_v12 = vld [vmem:[%s3454_s17 + $0x30] sm:$0xff]  ;;  %v3465_v13 = vld [vmem:[%s3454_s17 + $0x48] sm:$0xff]  ;;  %p3201_p12 = scmp.ne.s32.totalorder %s4623_s18, %s3200_s21  ;;  %s3206_s29 = scalar_lea.vmem %s3205_s23, 4096 }
  0x59   : > { %2930 = vmatprep.subr.bf16.mxu0 %v2929_v5  ;;  %v318_v14 = vld [vmem:[%s3454_s17 + $0x58] sm:$0xff]  ;;  %v2935_v15 = vpack.c.bf16 %v313_v12, %v311_v11  ;;  %v3470_v17 = vld [vmem:[%s3454_s17 + $0x40] sm:$0xff]  ;;  %v3473_v18 = vld [vmem:[%s3454_s17 + $0x50] sm:$0xff]  ;;  %p3207_p4 = scmp.lt.s32.totalorder %s4623_s18, %s3205_s23  ;;  %p3208_p7 = scmp.lt.s32.totalorder %s3206_s29, %s3200_s21 }
  0x5a   : > { %2932 = vmatpush1.bf16.msra.mxu0 %v2931_v9  ;;  %v2937_v16 = vpack.c.bf16 %v318_v14, %v3465_v13  ;;  %v320_v19 = vld [vmem:[%s3454_s17 + $0x68] sm:$0xff]  ;;  %v322_v20 = vld [vmem:[%s3454_s17 + $0x78] sm:$0xff]  ;;  %v2939_v21 = vpack.c.bf16 %v3473_v18, %v3470_v17  ;;  %v319_v25 = vld [vmem:[%s3454_s17 + $0x60] sm:$0xff]  ;;  %p3202_p2 = pnand %p3201_p12, %p4703_p1 }
  0x5b   : > { %2934 = vmatprep.subr.bf16.mxu0 %v2933_v10  ;;  %v2941_v24 = vpack.c.bf16 %v322_v20, %v320_v19  ;;  %v321_v26 = vld [vmem:[%s3454_s17 + $0x70] sm:$0xff]  ;;  %361 = vperm.xlu0 %3065, %v3508_v30   ;;  %p3209_p8 = por %p3208_p7, %p3207_p4 }
  0x5c   : > { %v2943_v29 = vpack.c.bf16 %v321_v26, %v319_v25  ;;  %366 = vperm.xlu1 %3066, %v3513_v31   ;;  %p3203_p3 = pneg %p3202_p2 }
  0x5e   : > { %2936 = vmatpush1.bf16.msra.mxu0 %v2935_v15  ;;  %p3210_p11 = pnand %p3209_p8, %p3203_p3 }
  0x5f   : > { %2938 = vmatprep.subr.bf16.mxu0 %v2937_v16  ;;  %371 = vperm.xlu0 %3065, %v3520_v33  }
  0x60   : > { %376 = vperm.xlu1 %3066, %v3526_v34  }
  0x62   : > { %2940 = vmatpush1.bf16.msra.mxu0 %v2939_v21 }
  0x63   : > { %2942 = vmatprep.subr.bf16.mxu0 %v2941_v24 }
  0x66   : > { %2944 = vmatpush1.bf16.msra.mxu0 %v2943_v29 }
  0x69   : > { %2834 = vmatmul.mubr.msk.f32.vlgmr.msra.gmra.mrb[0].mxu0 %vm379_vm0, %v323_v32 }
  0x6a   : > { %474 = vmatprep.mubr.f32.mxu0 %v3276_v0 }
  0x6d   : > { %2835 = vmatmul.mubr.msk.f32.gmra.mrb[2].mxu0 %vm379_vm0, %v324_v35 }
  0x6e   : > { %480 = vmatprep.mubr.f32.mxu0 %v3276_v0 }
  0x71   : > { %2836 = vmatmul.mubr.msk.f32.gmra.mrb[4].mxu0 %vm379_vm0, %v325_v36 }
  0x72   : > { %486 = vmatprep.mubr.f32.mxu0 %v3276_v0 }
  0x75   : > { %2837 = vmatmul.mubr.msk.f32.gmra.mrb[6].mxu0 %vm379_vm0, %v326_v37 }
  0x76   : > { %492 = vmatprep.mubr.f32.mxu0 %v3276_v0 }
  0x79   : > { %2838 = vmatmul.mubr.msk.f32.gmra.mrb[8].mxu0 %vm379_vm0, %v327_v38 }
  0x7a   : > { %498 = vmatprep.mubr.f32.mxu0 %v3276_v0 }
  0x7d   : > { %2839 = vmatmul.mubr.msk.f32.gmra.mrb[10].mxu0 %vm379_vm0, %v328_v39 }
  0x7e   : > { %504 = vmatprep.mubr.f32.mxu0 %v3276_v0 }
  0x81   : > { %2840 = vmatmul.mubr.msk.f32.gmra.mrb[12].mxu0 %vm379_vm0, %v329_v40 }
  0x82   : > { %510 = vmatprep.mubr.f32.mxu0 %v3276_v0 }
  0x85   : > { %2841 = vmatmul.mubr.msk.f32.gmra.mrb[14].mxu0 %vm379_vm0, %v330_v41 }
  0xd2   : > { %v342_v42 = vpop.permute.xlu0 %341  ;;  %v352_v54 = vpop.permute.xlu1 %351 }
  0xd6   : > { %v347_v47 = vpop.permute.xlu0 %346  ;;  %v357_v5 = vpop.permute.xlu1 %356 }
  0xda   : > { %v362_v16 = vpop.permute.xlu0 %361 }
  0xdb   : > { %v367_v36 = vpop.permute.xlu1 %366 }
 0x13c   : > { %v470_v43 = vpop.f32.mrb[0].mxu0 }
 0x13d   : > { %v471_v44 = vadd.f32 %v470_v43, %v342_v42  ;;  %v472_v45 = vpop.f32.mrb[1].mxu0 }
 0x13e   : > { %v473_v46 = vadd.f32 %v472_v45, %v342_v42 }
 0x13f   : > { %v533_v48 = vmul.f32 0.1, %v471_v44  ;;  %vm517_vm1 = vcmp.ge.f32.partialorder %v471_v44, 0.0 }
 0x140   : > { %v534_v49 = vmul.f32 0.1, %v473_v46  ;;  %v476_v50 = vpop.f32.mrb[2].mxu0  ;;  %vm518_vm2 = vcmp.ge.f32.partialorder %v473_v46, 0.0 }
 0x141   : > { %v477_v51 = vadd.f32 %v476_v50, %v347_v47  ;;  %v478_v52 = vpop.f32.mrb[3].mxu0  ;;  %v3544_v53 = vsel %vm517_vm1, %v471_v44, %v533_v48 }
 0x142   : > { %v479_v55 = vadd.f32 %v478_v52, %v347_v47  ;;  %v3546_v56 = vsel %vm518_vm2, %v473_v46, %v534_v49  ;;  %v372_v46 = vpop.permute.xlu0 %371  ;;  %vm565_vm2 = vcmp.ge.f32.partialorder %v3482_v22, 0.0 }
 0x143   : > { %v535_v57 = vmul.f32 0.1, %v477_v51  ;;  %v597_v58 = vadd.f32 %v3546_v56, %v3544_v53  ;;  %vm519_vm3 = vcmp.ge.f32.partialorder %v477_v51, 0.0 }
 0x144   : > { %v536_v59 = vmul.f32 0.1, %v479_v55  ;;  %v482_v60 = vpop.f32.mrb[4].mxu0  ;;  %vm520_vm4 = vcmp.ge.f32.partialorder %v479_v55, 0.0 }
 0x145   : > { %v483_v61 = vadd.f32 %v482_v60, %v352_v54  ;;  %v484_v62 = vpop.f32.mrb[5].mxu0  ;;  %598 = vadd.xlane.f32.xlu0 %v597_v58  ;;  %v3550_v63 = vsel %vm519_vm3, %v477_v51, %v535_v57  ;;  %v377_v58 = vpop.permute.xlu1 %376  ;;  %vm566_vm3 = vcmp.ge.f32.partialorder %v3495_v27, 0.0 }
 0x146   : > { %v485_v1 = vadd.f32 %v484_v62, %v352_v54  ;;  %v3552_v2 = vsel %vm520_vm4, %v479_v55, %v536_v59  ;;  %vm567_vm4 = vcmp.ge.f32.partialorder %v3487_v23, 0.0 }
 0x147   : > { %v537_v3 = vmul.f32 0.1, %v483_v61  ;;  %v600_v4 = vadd.f32 %v3552_v2, %v3550_v63  ;;  %vm521_vm5 = vcmp.ge.f32.partialorder %v483_v61, 0.0 }
 0x148   : > { %v538_v6 = vmul.f32 0.1, %v485_v1  ;;  %v488_v7 = vpop.f32.mrb[6].mxu0  ;;  %vm522_vm6 = vcmp.ge.f32.partialorder %v485_v1, 0.0 }
 0x149   : > { %v489_v8 = vadd.f32 %v488_v7, %v357_v5  ;;  %v490_v9 = vpop.f32.mrb[7].mxu0  ;;  %601 = vadd.xlane.f32.xlu1 %v600_v4  ;;  %v3556_v10 = vsel %vm521_vm5, %v483_v61, %v537_v3  ;;  %vm568_vm5 = vcmp.ge.f32.partialorder %v3501_v28, 0.0 }
 0x14a   : > { %v491_v11 = vadd.f32 %v490_v9, %v357_v5  ;;  %v3558_v12 = vsel %vm522_vm6, %v485_v1, %v538_v6  ;;  %vm569_vm6 = vcmp.ge.f32.partialorder %v3508_v30, 0.0 }
 0x14b   : > { %v539_v14 = vmul.f32 0.1, %v489_v8  ;;  %v603_v15 = vadd.f32 %v3558_v12, %v3556_v10  ;;  %vm523_vm7 = vcmp.ge.f32.partialorder %v489_v8, 0.0 }
 0x14c   : > { %v540_v19 = vmul.f32 0.1, %v491_v11  ;;  %v494_v20 = vpop.f32.mrb[8].mxu0  ;;  %vm524_vm8 = vcmp.ge.f32.partialorder %v491_v11, 0.0 }
 0x14d   : > { %v495_v21 = vadd.f32 %v494_v20, %v362_v16  ;;  %v496_v24 = vpop.f32.mrb[9].mxu0  ;;  %604 = vadd.xlane.f32.xlu0 %v603_v15  ;;  %v3562_v25 = vsel %vm523_vm7, %v489_v8, %v539_v14  ;;  %v573_v14 = vmul.f32 0.1, %v3482_v22  ;;  %vm570_vm7 = vcmp.ge.f32.partialorder %v3513_v31, 0.0 }
 0x14e   : > { %v497_v26 = vadd.f32 %v496_v24, %v362_v16  ;;  %v3564_v29 = vsel %vm524_vm8, %v491_v11, %v540_v19  ;;  %v574_v16 = vmul.f32 0.1, %v3495_v27  ;;  %vm571_vm8 = vcmp.ge.f32.partialorder %v3520_v33, 0.0 }
 0x14f   : > { %v541_v32 = vmul.f32 0.1, %v495_v21  ;;  %v606_v35 = vadd.f32 %v3564_v29, %v3562_v25  ;;  %vm525_vm9 = vcmp.ge.f32.partialorder %v495_v21, 0.0  ;;  %v581_v15 = vsel %vm565_vm2, %v3482_v22, %v573_v14 }
 0x150   : > { %v542_v37 = vmul.f32 0.1, %v497_v26  ;;  %v500_v38 = vpop.f32.mrb[10].mxu0  ;;  %vm526_vm10 = vcmp.ge.f32.partialorder %v497_v26, 0.0  ;;  %v589_v19 = vmul.f32 112.0, %v581_v15  ;;  %v582_v20 = vsel %vm566_vm3, %v3495_v27, %v574_v16 }
 0x151   : > { %v501_v39 = vadd.f32 %v500_v38, %v367_v36  ;;  %v502_v40 = vpop.f32.mrb[11].mxu0  ;;  %607 = vadd.xlane.f32.xlu0 %v606_v35  ;;  %v3568_v41 = vsel %vm525_vm9, %v495_v21, %v541_v32  ;;  %v575_v21 = vmul.f32 0.1, %v3487_v23  ;;  %v590_v32 = vmul.f32 112.0, %v582_v20 }
 0x152   : > { %v503_v42 = vadd.f32 %v502_v40, %v367_v36  ;;  %v3570_v43 = vsel %vm526_vm10, %v497_v26, %v542_v37  ;;  %v576_v36 = vmul.f32 0.1, %v3501_v28  ;;  %v577_v40 = vmul.f32 0.1, %v3508_v30 }
 0x153   : > { %v543_v44 = vmul.f32 0.1, %v501_v39  ;;  %v609_v45 = vadd.f32 %v3570_v43, %v3568_v41  ;;  %vm527_vm11 = vcmp.ge.f32.partialorder %v501_v39, 0.0  ;;  %v583_v35 = vsel %vm567_vm4, %v3487_v23, %v575_v21 }
 0x154   : > { %v544_v47 = vmul.f32 0.1, %v503_v42  ;;  %v506_v48 = vpop.f32.mrb[12].mxu0  ;;  %vm528_vm12 = vcmp.ge.f32.partialorder %v503_v42, 0.0  ;;  %v584_v27 = vsel %vm568_vm5, %v3501_v28, %v576_v36  ;;  %vm572_vm9 = vcmp.ge.f32.partialorder %v3526_v34, 0.0 }
 0x155   : > { %v507_v49 = vadd.f32 %v506_v48, %v372_v46  ;;  %v508_v50 = vpop.f32.mrb[13].mxu0  ;;  %610 = vadd.xlane.f32.xlu1 %v609_v45  ;;  %v3574_v51 = vsel %vm527_vm11, %v501_v39, %v543_v44  ;;  %v591_v39 = vmul.f32 112.0, %v583_v35  ;;  %v592_v23 = vmul.f32 112.0, %v584_v27  ;;  %v639_v35 = vld [vmem:[%s4673_s3 + $0x10] sm:$0xff]  ;;  %v641_v27 = vld [vmem:[%s4673_s3 + $0x20] sm:$0xff] }
 0x156   : > { %v509_v52 = vadd.f32 %v508_v50, %v372_v46  ;;  %v3576_v54 = vsel %vm528_vm12, %v503_v42, %v544_v47  ;;  %v585_v46 = vsel %vm569_vm6, %v3508_v30, %v577_v40  ;;  %v578_v47 = vmul.f32 0.1, %v3513_v31 }
 0x157   : > { %v545_v55 = vmul.f32 0.1, %v507_v49  ;;  %v612_v57 = vadd.f32 %v3576_v54, %v3574_v51  ;;  %vm529_vm13 = vcmp.ge.f32.partialorder %v507_v49, 0.0  ;;  %v593_v28 = vmul.f32 112.0, %v585_v46 }
 0x158   : > { %v546_v59 = vmul.f32 0.1, %v509_v52  ;;  %v512_v60 = vpop.f32.mrb[14].mxu0  ;;  %vm530_vm14 = vcmp.ge.f32.partialorder %v509_v52, 0.0  ;;  %vm693_vm10 = vcmask 31744  }
 0x159   : > { %v513_v61 = vadd.f32 %v512_v60, %v377_v58  ;;  %v514_v62 = vpop.f32.mrb[15].mxu0  ;;  %613 = vadd.xlane.f32.xlu0 %v612_v57  ;;  %v3580_v1 = vsel %vm529_vm13, %v507_v49, %v545_v55  ;;  %v579_v55 = vmul.f32 0.1, %v3520_v33 }
 0x15a   : > { %v515_v3 = vadd.f32 %v514_v62, %v377_v58  ;;  %v3582_v4 = vsel %vm530_vm14, %v509_v52, %v546_v59  ;;  %v586_v52 = vsel %vm570_vm7, %v3513_v31, %v578_v47 }
 0x15b   : > { %v547_v5 = vmul.f32 0.1, %v513_v61  ;;  %v615_v6 = vadd.f32 %v3582_v4, %v3580_v1  ;;  %vm531_vm15 = vcmp.ge.f32.partialorder %v513_v61, 0.0  ;;  %v594_v30 = vmul.f32 112.0, %v586_v52 }
 0x15c   : > { %v548_v7 = vmul.f32 0.1, %v515_v3  ;;  %vm532_vm1 = vcmp.ge.f32.partialorder %v515_v3, 0.0  ;;  %v587_v60 = vsel %vm571_vm8, %v3520_v33, %v579_v55  ;;  %v643_v55 = vld [vmem:[%s4673_s3 + $0x30] sm:$0xff] }
 0x15d   : > { %616 = vadd.xlane.f32.xlu1 %v615_v6  ;;  %v3586_v8 = vsel %vm531_vm15, %v513_v61, %v547_v5  ;;  %v580_v61 = vmul.f32 0.1, %v3526_v34  ;;  %v595_v31 = vmul.f32 112.0, %v587_v60 }
 0x15e   : > { %v3588_v9 = vsel %vm532_vm1, %v515_v3, %v548_v7 }
 0x15f   : > { %v618_v11 = vadd.f32 %v3588_v9, %v3586_v8  ;;  %v588_v6 = vsel %vm572_vm9, %v3526_v34, %v580_v61  ;;  %v637_v34 = vld [vmem:[%s4673_s3] sm:$0xff] }
 0x160   : > { %v596_v15 = vmul.f32 112.0, %v588_v6 }
 0x161   : > { %619 = vadd.xlane.f32.xlu0 %v618_v11 }
 0x1d2   : > { %v599_v24 = vpop.xlane.xlu0 %598 }
 0x1d3   : > { %v621_v26 = vsub.f32 %v599_v24, %v589_v19 }
 0x1d5   : > { %v629_v37 = vmul.f32 0.0069444445, %v621_v26  ;;  %v638_v26 = vld [vmem:[%s4673_s3 + $0x8] sm:$0xff] }
 0x1d6   : > { %v602_v22 = vpop.xlane.xlu1 %601 }
 0x1d7   : > { %v622_v38 = vsub.f32 %v602_v22, %v590_v32  ;;  %647 = vperm.xlu1 %3066, %v629_v37   ;;  %v640_v37 = vld [vmem:[%s4673_s3 + $0x18] sm:$0xff] }
 0x1d9   : > { %v630_v42 = vmul.f32 0.0069444445, %v622_v38 }
 0x1da   : > { %v605_v44 = vpop.xlane.xlu0 %604 }
 0x1db   : > { %v623_v45 = vsub.f32 %v605_v44, %v591_v39  ;;  %652 = vperm.xlu0 %3065, %v630_v42  }
 0x1dd   : > { %v631_v48 = vmul.f32 0.0069444445, %v623_v45  ;;  %v642_v45 = vld [vmem:[%s4673_s3 + $0x28] sm:$0xff] }
 0x1de   : > { %v608_v49 = vpop.xlane.xlu0 %607 }
 0x1df   : > { %v624_v50 = vsub.f32 %v608_v49, %v592_v23  ;;  %657 = vperm.xlu1 %3066, %v631_v48  }
 0x1e1   : > { %v632_v57 = vmul.f32 0.0069444445, %v624_v50 }
 0x1e2   : > { %v611_v58 = vpop.xlane.xlu1 %610 }
 0x1e3   : > { %v625_v59 = vsub.f32 %v611_v58, %v593_v28  ;;  %662 = vperm.xlu1 %3066, %v632_v57  }
 0x1e5   : > { %v633_v62 = vmul.f32 0.0069444445, %v625_v59 }
 0x1e6   : > { %v614_v3 = vpop.xlane.xlu0 %613 }
 0x1e7   : > { %v626_v5 = vsub.f32 %v614_v3, %v594_v30  ;;  %667 = vperm.xlu0 %3065, %v633_v62   ;;  %v644_v62 = vld [vmem:[%s4673_s3 + $0x38] sm:$0xff] }
 0x1e9   : > { %v634_v7 = vmul.f32 0.0069444445, %v626_v5 }
 0x1ea   : > { %v617_v11 = vpop.xlane.xlu1 %616 }
 0x1eb   : > { %v627_v14 = vsub.f32 %v617_v11, %v595_v31  ;;  %672 = vperm.xlu1 %3066, %v634_v7  }
 0x1ed   : > { %v635_v16 = vmul.f32 0.0069444445, %v627_v14 }
 0x1ee   : > { %v620_v19 = vpop.xlane.xlu0 %619 }
 0x1ef   : > { %v628_v20 = vsub.f32 %v620_v19, %v596_v15  ;;  %677 = vperm.xlu0 %3065, %v635_v16  }
 0x1f1   : > { %v636_v33 = vmul.f32 0.0069444445, %v628_v20 }
 0x1f3   : > { %682 = vperm.xlu1 %3066, %v636_v33  }
 0x256   : > { %v648_v21 = vpop.permute.xlu1 %647 }
 0x257   : > { %v685_v38 = vmul.f32 %v648_v21, %v637_v34  ;;  %v720_v34 = vld [vmem:[%s4674_s4 + $0x20] sm:$0xff] }
 0x259   : > { %v694_v23 = vsel %vm693_vm10, %v685_v38, 0.0 }
 0x25a   : > { %v653_v32 = vpop.permute.xlu0 %652 }
 0x25b   : > { %v686_v36 = vmul.f32 %v653_v32, %v638_v26  ;;  %v716_v26 = vld [vmem:[%s4674_s4] sm:$0xff] }
 0x25d   : > { %v695_v42 = vsel %vm693_vm10, %v686_v36, 0.0 }
 0x25e   : > { %v658_v24 = vpop.permute.xlu1 %657  ;;  %v696_v48 = vadd.f32 %v695_v42, %v694_v23  ;;  %v719_v42 = vld [vmem:[%s4674_s4 + $0x18] sm:$0xff] }
 0x25f   : > { %v687_v39 = vmul.f32 %v658_v24, %v639_v35  ;;  %v717_v24 = vld [vmem:[%s4674_s4 + $0x8] sm:$0xff]  ;;  %v718_v35 = vld [vmem:[%s4674_s4 + $0x10] sm:$0xff] }
 0x261   : > { %v697_v46 = vsel %vm693_vm10, %v687_v39, 0.0 }
 0x262   : > { %v663_v22 = vpop.permute.xlu1 %662  ;;  %v698_v52 = vadd.f32 %v697_v46, %v696_v48 }
 0x263   : > { %v688_v44 = vmul.f32 %v663_v22, %v640_v37 }
 0x265   : > { %v699_v50 = vsel %vm693_vm10, %v688_v44, 0.0 }
 0x266   : > { %v668_v40 = vpop.permute.xlu0 %667  ;;  %v700_v58 = vadd.f32 %v699_v50, %v698_v52 }
 0x267   : > { %v689_v47 = vmul.f32 %v668_v40, %v641_v27  ;;  %v722_v40 = vld [vmem:[%s4674_s4 + $0x30] sm:$0xff] }
 0x269   : > { %v701_v57 = vsel %vm693_vm10, %v689_v47, 0.0  ;;  %v721_v47 = vld [vmem:[%s4674_s4 + $0x28] sm:$0xff] }
 0x26a   : > { %v673_v49 = vpop.permute.xlu1 %672  ;;  %v702_v61 = vadd.f32 %v701_v57, %v700_v58  ;;  %v832_v58 = vld [vmem:[%s4676_s6 + $0x20] sm:$0xff] }
 0x26b   : > { %v690_v28 = vmul.f32 %v673_v49, %v642_v45 }
 0x26d   : > { %v703_v30 = vsel %vm693_vm10, %v690_v28, 0.0  ;;  %v723_v28 = vld [vmem:[%s4674_s4 + $0x38] sm:$0xff] }
 0x26e   : > { %v678_v59 = vpop.permute.xlu0 %677  ;;  %v704_v5 = vadd.f32 %v703_v30, %v702_v61  ;;  %v835_v30 = vld [vmem:[%s4676_s6 + $0x38] sm:$0xff]  ;;  %v833_v61 = vld [vmem:[%s4676_s6 + $0x28] sm:$0xff] }
 0x26f   : > { %v691_v60 = vmul.f32 %v678_v59, %v643_v55  ;;  %v834_v59 = vld [vmem:[%s4676_s6 + $0x30] sm:$0xff] }
 0x271   : > { %v705_v3 = vsel %vm693_vm10, %v691_v60, 0.0  ;;  %v829_v60 = vld [vmem:[%s4676_s6 + $0x8] sm:$0xff] }
 0x272   : > { %v683_v31 = vpop.permute.xlu1 %682  ;;  %v706_v7 = vadd.f32 %v705_v3, %v704_v5  ;;  %v828_v3 = vld [vmem:[%s4676_s6] sm:$0xff]  ;;  %v830_v5 = vld [vmem:[%s4676_s6 + $0x10] sm:$0xff] }
 0x273   : > { %v692_v6 = vmul.f32 %v683_v31, %v644_v62  ;;  %v831_v62 = vld [vmem:[%s4676_s6 + $0x18] sm:$0xff] }
 0x275   : > { %v707_v11 = vsel %vm693_vm10, %v692_v6, 0.0 }
 0x276   : > { %v708_v14 = vadd.f32 %v707_v11, %v706_v7 }
 0x278   : > { %v709_v15 = vrot.slane %v708_v14, 4 }
 0x27a   : > { %v710_v16 = vadd.f32 %v709_v15, %v708_v14 }
 0x27c   : > { %v711_v19 = vrot.slane %v710_v16, 2 }
 0x27e   : > { %v712_v20 = vadd.f32 %v711_v19, %v710_v16 }
 0x280   : > { %v713_v33 = vrot.slane %v712_v20, 1 }
 0x282   : > { %v714_v21 = vadd.f32 %v713_v33, %v712_v20 }
 0x284   : > { %v715_v32 = vmax.f32 %v714_v21, 0.0 }
 0x286   : > { %v725_v36 = vmul.f32 %v717_v24, %v715_v32  ;;  %v724_v37 = vmul.f32 %v716_v26, %v715_v32  ;;  %v728_v39 = vmul.f32 %v720_v34, %v715_v32  ;;  %v726_v27 = vmul.f32 %v718_v35, %v715_v32 }
 0x287   : > { %v730_v23 = vmul.f32 %v722_v40, %v715_v32  ;;  %v727_v46 = vmul.f32 %v719_v42, %v715_v32  ;;  %v729_v50 = vmul.f32 %v721_v47, %v715_v32  ;;  %v731_v55 = vmul.f32 %v723_v28, %v715_v32 }
 0x288   : > { %v735_v22 = vsel %vm693_vm10, %v725_v36, 0.0  ;;  %v732_v38 = vsel %vm693_vm10, %v724_v37, 0.0  ;;  %v744_v44 = vsel %vm693_vm10, %v728_v39, 0.0  ;;  %v738_v45 = vsel %vm693_vm10, %v726_v27, 0.0 }
 0x289   : > { %736 = vadd.xlane.f32.xlu1 %v735_v22  ;;  %733 = vadd.xlane.f32.xlu0 %v732_v38  ;;  %v750_v48 = vsel %vm693_vm10, %v730_v23, 0.0  ;;  %v741_v49 = vsel %vm693_vm10, %v727_v46, 0.0  ;;  %v747_v52 = vsel %vm693_vm10, %v729_v50, 0.0  ;;  %v753_v57 = vsel %vm693_vm10, %v731_v55, 0.0 }
 0x28d   : > { %745 = vadd.xlane.f32.xlu1 %v744_v44  ;;  %739 = vadd.xlane.f32.xlu0 %v738_v45 }
 0x291   : > { %751 = vadd.xlane.f32.xlu1 %v750_v48  ;;  %742 = vadd.xlane.f32.xlu0 %v741_v49 }
 0x295   : > { %748 = vadd.xlane.f32.xlu0 %v747_v52 }
 0x299   : > { %754 = vadd.xlane.f32.xlu0 %v753_v57 }
 0x2a2   : > { %858 = vperm.xlu1 %3066, %v832_v58  }
 0x2a6   : > { %868 = vperm.xlu1 %3066, %v834_v59  }
 0x2aa   : > { %873 = vperm.xlu1 %3066, %v835_v30  }
 0x2ae   : > { %843 = vperm.xlu1 %3066, %v829_v60  }
 0x2af   : > { %863 = vperm.xlu0 %3065, %v833_v61  }
 0x2b2   : > { %853 = vperm.xlu1 %3066, %v831_v62  }
 0x2b3   : > { %838 = vperm.xlu0 %3065, %v828_v3  }
 0x2b7   : > { %848 = vperm.xlu0 %3065, %v830_v5  }
 0x316   : > { %v737_v31 = vpop.xlane.xlu1 %736  ;;  %v734_v6 = vpop.xlane.xlu0 %733 }
 0x317   : > { %v2843_v7 = vmul.f32 -1.442695, %v737_v31  ;;  %v2842_v11 = vmul.f32 -1.442695, %v734_v6 }
 0x319   : > { %3067 = vpow2.f32 %v2843_v7 }
 0x31a   : > { %3069 = vpow2.f32 %v2842_v11  ;;  %v746_v14 = vpop.xlane.xlu1 %745  ;;  %v740_v15 = vpop.xlane.xlu0 %739 }
 0x31b   : > { %v2846_v16 = vmul.f32 -1.442695, %v746_v14  ;;  %v2844_v19 = vmul.f32 -1.442695, %v740_v15 }
 0x31d   : > { %3071 = vpow2.f32 %v2844_v19 }
 0x31e   : > { %v752_v20 = vpop.xlane.xlu1 %751  ;;  %v743_v33 = vpop.xlane.xlu0 %742  ;;  %3073 = vpow2.f32 %v2846_v16 }
 0x31f   : > { %v2848_v21 = vmul.f32 -1.442695, %v752_v20  ;;  %v2845_v24 = vmul.f32 -1.442695, %v743_v33  ;;  %v821_v33 = vld [vmem:[#allocation5 + $0x8] sm:$0xff] }
 0x321   : > { %3075 = vpow2.f32 %v2845_v24  ;;  %v827_v24 = vld [vmem:[#allocation5 + $0x38] sm:$0xff] }
 0x322   : > { %v749_v26 = vpop.xlane.xlu0 %748  ;;  %3077 = vpow2.f32 %v2848_v21  ;;  %v826_v21 = vld [vmem:[#allocation5 + $0x30] sm:$0xff] }
 0x323   : > { %v3068_v32 = vpop.eup %3067  ;;  %v2847_v34 = vmul.f32 -1.442695, %v749_v26 }
 0x324   : > { %v3070_v35 = vpop.eup %3069  ;;  %v781_v36 = vadd.f32 1.0, %v3068_v32 }
 0x325   : > { %v780_v37 = vadd.f32 1.0, %v3070_v35  ;;  %3079 = vpow2.f32 %v2847_v34 }
 0x326   : > { %3081 = vrcp.f32 %v781_v36  ;;  %v755_v22 = vpop.xlane.xlu0 %754 }
 0x327   : > { %3083 = vrcp.f32 %v780_v37  ;;  %v2849_v38 = vmul.f32 -1.442695, %v755_v22  ;;  %v3072_v39 = vpop.eup %3071 }
 0x328   : > { %v3074_v27 = vpop.eup %3073  ;;  %v782_v40 = vadd.f32 1.0, %v3072_v39 }
 0x329   : > { %3085 = vpow2.f32 %v2849_v38  ;;  %v784_v44 = vadd.f32 1.0, %v3074_v27 }
 0x32a   : > { %3087 = vrcp.f32 %v782_v40 }
 0x32b   : > { %v3076_v42 = vpop.eup %3075 }
 0x32c   : > { %v3078_v45 = vpop.eup %3077  ;;  %v783_v23 = vadd.f32 1.0, %v3076_v42 }
 0x32d   : > { %v786_v48 = vadd.f32 1.0, %v3078_v45 }
 0x32e   : > { %3089 = vrcp.f32 %v783_v23 }
 0x32f   : > { %v3080_v46 = vpop.eup %3079  ;;  %3091 = vrcp.f32 %v784_v44 }
 0x330   : > { %v3082_v47 = vpop.eup %3081  ;;  %v785_v49 = vadd.f32 1.0, %v3080_v46 }
 0x331   : > { %v3084_v50 = vpop.eup %3083  ;;  %v807_v28 = vmul.f32 %v3082_v47, %v3552_v2  ;;  %v806_v52 = vmul.f32 %v3082_v47, %v3550_v63 }
 0x332   : > { %3093 = vrcp.f32 %v785_v49  ;;  %v805_v55 = vmul.f32 %v3084_v50, %v3546_v56  ;;  %v804_v57 = vmul.f32 %v3084_v50, %v3544_v53  ;;  %v3761_v49 = vpop.permute.xlu0 %863 }
 0x333   : > { %v3086_v58 = vpop.eup %3085  ;;  %3095 = vrcp.f32 %v786_v48 }
 0x334   : > { %v787_v59 = vadd.f32 1.0, %v3086_v58  ;;  %v2945_v30 = vpack.c.bf16 %v807_v28, %v805_v55  ;;  %v2947_v60 = vpack.c.bf16 %v806_v52, %v804_v57  ;;  %v3088_v61 = vpop.eup %3087 }
 0x335   : > { %v809_v2 = vmul.f32 %v3088_v61, %v3558_v12  ;;  %v808_v5 = vmul.f32 %v3088_v61, %v3556_v10 }
 0x336   : > { %3097 = vrcp.f32 %v787_v59  ;;  %2946 = vmatprep.subr.bf16.mxu1 %v2945_v30 }
 0x337   : > { %2948 = vmatpush1.bf16.msra.mxu1 %v2947_v60 }
 0x338   : > { %v3090_v62 = vpop.eup %3089 }
 0x339   : > { %v3092_v3 = vpop.eup %3091  ;;  %v811_v63 = vmul.f32 %v3090_v62, %v3564_v29  ;;  %v810_v56 = vmul.f32 %v3090_v62, %v3562_v25 }
 0x33a   : > { %v813_v7 = vmul.f32 %v3092_v3, %v3570_v43  ;;  %v812_v14 = vmul.f32 %v3092_v3, %v3568_v41 }
 0x33b   : > { %v2949_v31 = vpack.c.bf16 %v811_v63, %v809_v2  ;;  %v2951_v6 = vpack.c.bf16 %v810_v56, %v808_v5 }
 0x33c   : > { %v3094_v53 = vpop.eup %3093 }
 0x33d   : > { %v815_v11 = vmul.f32 %v3094_v53, %v3576_v54  ;;  %v814_v15 = vmul.f32 %v3094_v53, %v3574_v51  ;;  %v3096_v16 = vpop.eup %3095  ;;  %2950 = vmatprep.subr.bf16.mxu1 %v2949_v31  ;;  %v820_v51 = vld [vmem:[#allocation5] sm:$0xff] }
 0x33e   : > { %2952 = vmatpush1.bf16.msra.mxu1 %v2951_v6  ;;  %v817_v10 = vmul.f32 %v3096_v16, %v3582_v4  ;;  %v816_v20 = vmul.f32 %v3096_v16, %v3580_v1  ;;  %v822_v4 = vld [vmem:[#allocation5 + $0x10] sm:$0xff]  ;;  %v823_v1 = vld [vmem:[#allocation5 + $0x18] sm:$0xff] }
 0x33f   : > { %v2953_v12 = vpack.c.bf16 %v815_v11, %v813_v7  ;;  %v2955_v29 = vpack.c.bf16 %v814_v15, %v812_v14 }
 0x340   : > { %v3098_v19 = vpop.eup %3097 }
 0x341   : > { %2954 = vmatprep.subr.bf16.mxu1 %v2953_v12  ;;  %v819_v25 = vmul.f32 %v3098_v19, %v3588_v9  ;;  %v818_v43 = vmul.f32 %v3098_v19, %v3586_v8  ;;  %v824_v8 = vld [vmem:[#allocation5 + $0x20] sm:$0xff]  ;;  %v825_v9 = vld [vmem:[#allocation5 + $0x28] sm:$0xff] }
 0x342   : > { %2956 = vmatpush1.bf16.msra.mxu1 %v2955_v29  ;;  %v3278_v29 = vmov 683565275  }
 0x343   : > { %v2957_v54 = vpack.c.bf16 %v819_v25, %v817_v10  ;;  %v2959_v41 = vpack.c.bf16 %v818_v43, %v816_v20  ;;  %v3279_v20 = vmov 2475754826  }
 0x345   : > { %2958 = vmatprep.subr.bf16.mxu1 %v2957_v54  ;;  %v3280_v54 = vmov 2131351028  }
 0x346   : > { %2960 = vmatpush1.bf16.msra.mxu1 %v2959_v41 }
 0x349   : > { %2850 = vmatmul.mubr.msk.f32.vlgmr.msra.gmra.mrb[0].mxu1 %vm379_vm0, %v820_v51  ;;  %v3281_v51 = vmov 2102212464  }
 0x34a   : > { %970 = vmatprep.mubr.f32.mxu1 %v3276_v0 }
 0x34d   : > { %2851 = vmatmul.mubr.msk.f32.gmra.mrb[2].mxu1 %vm379_vm0, %v821_v33 }
 0x34e   : > { %976 = vmatprep.mubr.f32.mxu1 %v3276_v0 }
 0x351   : > { %2852 = vmatmul.mubr.msk.f32.gmra.mrb[4].mxu1 %vm379_vm0, %v822_v4  ;;  %v3282_v4 = vmov 920167782  }
 0x352   : > { %982 = vmatprep.mubr.f32.mxu1 %v3276_v0 }
 0x355   : > { %2853 = vmatmul.mubr.msk.f32.gmra.mrb[6].mxu1 %vm379_vm0, %v823_v1 }
 0x356   : > { %988 = vmatprep.mubr.f32.mxu1 %v3276_v0 }
 0x359   : > { %2854 = vmatmul.mubr.msk.f32.gmra.mrb[8].mxu1 %vm379_vm0, %v824_v8 }
 0x35a   : > { %994 = vmatprep.mubr.f32.mxu1 %v3276_v0 }
 0x35d   : > { %2855 = vmatmul.mubr.msk.f32.gmra.mrb[10].mxu1 %vm379_vm0, %v825_v9 }
 0x35e   : > { %1000 = vmatprep.mubr.f32.mxu1 %v3276_v0 }
 0x361   : > { %2856 = vmatmul.mubr.msk.f32.gmra.mrb[12].mxu1 %vm379_vm0, %v826_v21 }
 0x362   : > { %1006 = vmatprep.mubr.f32.mxu1 %v3276_v0  ;;  %v859_v0 = vpop.permute.xlu1 %858 }
 0x365   : > { %2857 = vmatmul.mubr.msk.f32.gmra.mrb[14].mxu1 %vm379_vm0, %v827_v24 }
 0x41c   : > { %v3735_v26 = vpop.f32.mrb[0].mxu1 }
 0x41d   : > { %v3737_v32 = vpop.f32.mrb[1].mxu1 }
 0x420   : > { %v3739_v34 = vpop.f32.mrb[2].mxu1 }
 0x421   : > { %v3741_v35 = vpop.f32.mrb[3].mxu1 }
 0x424   : > { %v3743_v36 = vpop.f32.mrb[4].mxu1 }
 0x425   : > { %v3745_v37 = vpop.f32.mrb[5].mxu1 }
 0x428   : > { %v3747_v22 = vpop.f32.mrb[6].mxu1 }
 0x429   : > { %v3749_v38 = vpop.f32.mrb[7].mxu1 }
 0x42c   : > { %v990_v39 = vpop.f32.mrb[8].mxu1 }
 0x42d   : > { %v991_v27 = vadd.f32 %v990_v39, %v859_v0  ;;  %v992_v40 = vpop.f32.mrb[9].mxu1  ;;  %v3283_v39 = vmov 1326507024  }
 0x42e   : > { %v993_v42 = vadd.f32 %v992_v40, %v859_v0 }
 0x42f   : > { %v3752_v44 = vadd.f32 %v991_v27, %v3470_v17 }
 0x430   : > { %v3755_v45 = vadd.f32 %v993_v42, %v3465_v13  ;;  %v996_v23 = vpop.f32.mrb[10].mxu1 }
 0x431   : > { %v1037_v46 = vand.u32 2147483647, %v3752_v44  ;;  %v1040_v47 = vand.u32 2139095040, %v3752_v44  ;;  %v3759_v48 = vpop.f32.mrb[11].mxu1  ;;  %v997_v17 = vadd.f32 %v996_v23, %v3761_v49  ;;  %vm1039_vm8 = vcmp.lt.s32.totalorder %v3752_v44, 0 }
 0x432   : > { %v1140_v50 = vand.u32 2147483647, %v3755_v45  ;;  %v1143_v28 = vand.u32 2139095040, %v3755_v45 }
 0x433   : > { %v1041_v52 = vshrl.u32 %v1040_v47, 23  ;;  %v1044_v13 = vand.u32 8388607, %v1037_v46  ;;  %v3773_v30 = vadd.f32 %v997_v17, %v3473_v18  ;;  %vm3876_vm9 = vcmp.le.f32.partialorder %v1037_v46, 0.7853982 }
 0x434   : > { %v1144_v55 = vshrl.u32 %v1143_v28, 23  ;;  %v1147_v57 = vand.u32 8388607, %v1140_v50  ;;  %v3770_v58 = vpop.f32.mrb[12].mxu1 }
 0x435   : > { %v2858_v59 = vadd.s32 4294967169, %v1041_v52  ;;  %v3775_v60 = vpop.f32.mrb[13].mxu1  ;;  %v1045_v3 = vor.u32 8388608, %v1044_v13  ;;  %v1246_v5 = vand.u32 2139095040, %v3773_v30  ;;  %v1243_v16 = vand.u32 2147483647, %v3773_v30 }
 0x436   : > { %v2862_v61 = vadd.s32 4294967169, %v1144_v55  ;;  %v1148_v2 = vor.u32 8388608, %v1147_v57 }
 0x437   : > { %v1047_v62 = vadd.s32 1, %v2858_v59  ;;  %v1247_v31 = vshrl.u32 %v1246_v5, 23  ;;  %v3780_v18 = vshll.u32 %v1045_v3, 8 }
 0x438   : > { %v1150_v63 = vadd.s32 1, %v2862_v61  ;;  %v3778_v56 = vpop.f32.mrb[14].mxu1  ;;  %v3784_v15 = vshll.u32 %v1148_v2, 8 }
 0x439   : > { %vm1048_vm0 = vcmp.gt.s32.totalorder %v1047_v62, 0  ;;  %v3788_v25 = vadd.s32 4294967169, %v1247_v31 }
 0x43a   : > { %v1049_v53 = vsel %vm1048_vm0, %v1047_v62, 0  ;;  %vm1151_vm11 = vcmp.gt.s32.totalorder %v1150_v63, 0  ;;  %vm1142_vm0 = vcmp.lt.s32.totalorder %v3755_v45, 0 }
 0x43b   : > { %v1050_v6 = vshrl.u32 %v1049_v53, 5  ;;  %v1051_v7 = vand.u32 31, %v1049_v53  ;;  %v1152_v11 = vsel %vm1151_vm11, %v1150_v63, 0 }
 0x43c   : > { %v3782_v14 = vshrl.u32 %v1152_v11, 5  ;;  %v1154_v10 = vand.u32 31, %v1152_v11 }
 0x43d   : > { %v1052_v12 = vsub.s32 32, %v1051_v7  ;;  %v1054_v19 = vshll.u32 %v3278_v29, %v1051_v7  ;;  %v1057_v43 = vshll.u32 %v3279_v20, %v1051_v7  ;;  %v1060_v41 = vshll.u32 %v3280_v54, %v1051_v7 }
 0x43e   : > { %v1063_v33 = vshll.u32 %v3281_v51, %v1051_v7  ;;  %v1066_v1 = vshll.u32 %v3282_v4, %v1051_v7  ;;  %vm1069_vm12 = vcmp.lt.s32.totalorder %v1050_v6, 1  ;;  %vm1070_vm13 = vcmp.lt.s32.totalorder %v1050_v6, 2 }
 0x43f   : > { %v1055_v8 = vshrl.u32 %v3279_v20, %v1052_v12  ;;  %v1058_v9 = vshrl.u32 %v3280_v54, %v1052_v12  ;;  %v1061_v21 = vshrl.u32 %v3281_v51, %v1052_v12  ;;  %v1053_v24 = vshrl.u32 %v3278_v29, %v1052_v12 }
 0x440   : > { %v1064_v0 = vshrl.u32 %v3282_v4, %v1052_v12  ;;  %v1067_v27 = vshrl.u32 %v3283_v39, %v1052_v12  ;;  %v1155_v47 = vsub.s32 32, %v1154_v10  ;;  %vm1071_vm14 = vcmp.lt.s32.totalorder %v1050_v6, 3 }
 0x441   : > { %v1056_v40 = vor.u32 %v1055_v8, %v1054_v19  ;;  %v1059_v42 = vor.u32 %v1058_v9, %v1057_v43  ;;  %v1062_v23 = vor.u32 %v1061_v21, %v1060_v41  ;;  %vm1072_vm15 = vcmp.lt.s32.totalorder %v1050_v6, 4 }
 0x442   : > { %v1065_v28 = vor.u32 %v1064_v0, %v1063_v33  ;;  %v1068_v52 = vor.u32 %v1067_v27, %v1066_v1  ;;  %v1157_v3 = vshll.u32 %v3278_v29, %v1154_v10  ;;  %v1158_v5 = vshrl.u32 %v3279_v20, %v1155_v47 }
 0x443   : > { %v1073_v17 = vsel %vm1069_vm12, %v1053_v24, %v1056_v40  ;;  %v1074_v13 = vsel %vm1072_vm15, %v1062_v23, 2102212464  ;;  %v1077_v55 = vsel %vm1069_vm12, %v1056_v40, %v1059_v42  ;;  %v1081_v57 = vsel %vm1069_vm12, %v1059_v42, %v1062_v23  ;;  %v3821_v24 = vpop.f32.mrb[15].mxu1 }
 0x444   : > { %v1075_v59 = vsel %vm1071_vm14, %v1059_v42, %v1074_v13  ;;  %v1078_v61 = vsel %vm1072_vm15, %v1065_v28, 920167782  ;;  %v1082_v62 = vsel %vm1072_vm15, %v1068_v52, 1326507024  ;;  %v1160_v53 = vshll.u32 %v3279_v20, %v1154_v10 }
 0x445   : > { %v1079_v2 = vsel %vm1071_vm14, %v1062_v23, %v1078_v61  ;;  %v1083_v63 = vsel %vm1071_vm14, %v1065_v28, %v1082_v62  ;;  %v1076_v31 = vsel %vm1070_vm13, %v1073_v17, %v1075_v59  ;;  %v1161_v12 = vshrl.u32 %v3280_v54, %v1155_v47 }
 0x446   : > { %v1080_v7 = vsel %vm1070_vm13, %v1077_v55, %v1079_v2  ;;  %v1084_v11 = vsel %vm1070_vm13, %v1081_v57, %v1083_v63  ;;  %v1159_v1 = vor.u32 %v1158_v5, %v1157_v3  ;;  %v1163_v9 = vshll.u32 %v3280_v54, %v1154_v10 }
 0x447   : > { %v3811_v19 = vmul.u32.u64.low %v3780_v18, %v1084_v11  ;;  %v3812_v43 = vmul.u32.u64.high %v3780_v18, %v1084_v11, %v3811_v19  ;;  %v3815_v41 = vmul.u32.u64.low %v3780_v18, %v1080_v7  ;;  %v3816_v33 = vmul.u32.u64.high %v3780_v18, %v1080_v7, %v3815_v41 }
 0x448   : > { %v1162_v8 = vor.u32 %v1161_v12, %v1160_v53  ;;  %v1164_v21 = vshrl.u32 %v3281_v51, %v1155_v47  ;;  %v1156_v6 = vshrl.u32 %v3278_v29, %v1155_v47  ;;  %v1166_v0 = vshll.u32 %v3281_v51, %v1154_v10 }
 0x449   : > { %v1167_v27 = vshrl.u32 %v3282_v4, %v1155_v47  ;;  %v1170_v40 = vshrl.u32 %v3283_v39, %v1155_v47  ;;  %v1092_v42 = vmul.u32 %v3780_v18, %v1076_v31  ;;  %v1169_v28 = vshll.u32 %v3282_v4, %v1154_v10 }
 0x44a   : > { %v1165_v23 = vor.u32 %v1164_v21, %v1163_v9  ;;  %vm1172_vm1 = vcmp.lt.s32.totalorder %v3782_v14, 1  ;;  %vm1094_vm2 = vc.u32 %v3812_v43, %v3815_v41  ;;  %v1095_v52 = vadd.s32 1, %v3816_v33 }
 0x44b   : > { %v1168_v17 = vor.u32 %v1167_v27, %v1166_v0  ;;  %vm1173_vm3 = vcmp.lt.s32.totalorder %v3782_v14, 2  ;;  %v1171_v13 = vor.u32 %v1170_v40, %v1169_v28  ;;  %vm1174_vm4 = vcmp.lt.s32.totalorder %v3782_v14, 3  ;;  %v839_v40 = vpop.permute.xlu0 %838 }
 0x44c   : > { %vm1175_vm5 = vcmp.lt.s32.totalorder %v3782_v14, 4  ;;  %v1180_v47 = vsel %vm1172_vm1, %v1159_v1, %v1162_v8  ;;  %v1096_v18 = vsel %vm1094_vm2, %v1095_v52, %v3816_v33  ;;  %v1184_v57 = vsel %vm1172_vm1, %v1162_v8, %v1165_v23 }
 0x44d   : > { %v1177_v55 = vsel %vm1175_vm5, %v1165_v23, 2102212464  ;;  %v1181_v10 = vsel %vm1175_vm5, %v1168_v17, 920167782  ;;  %v1097_v59 = vadd.s32 %v1096_v18, %v1092_v42  ;;  %v1176_v61 = vsel %vm1172_vm1, %v1156_v6, %v1159_v1 }
 0x44e   : > { %v1182_v62 = vsel %vm1174_vm4, %v1165_v23, %v1181_v10  ;;  %v1185_v3 = vsel %vm1175_vm5, %v1171_v13, 1326507024  ;;  %v1178_v2 = vsel %vm1174_vm4, %v1162_v8, %v1177_v55  ;;  %v1253_v53 = vadd.s32 1, %v3788_v25  ;;  %v3131_v23 = vld [vmem:[%s3454_s17 + $0x58] sm:$0xff] }
 0x44f   : > { %v1183_v63 = vsel %vm1173_vm3, %v1180_v47, %v1182_v62  ;;  %v1186_v5 = vsel %vm1174_vm4, %v1168_v17, %v1185_v3  ;;  %v1098_v31 = vadd.s32 536870912, %v1097_v59  ;;  %v999_v1 = vadd.f32 %v3759_v48, %v3761_v49 }
 0x450   : > { %v1187_v7 = vsel %vm1173_vm3, %v1184_v57, %v1186_v5  ;;  %v3843_v11 = vmul.u32.u64.low %v3784_v15, %v1183_v63  ;;  %v3844_v12 = vmul.u32.u64.high %v3784_v15, %v1183_v63, %v3843_v11  ;;  %vm1254_vm6 = vcmp.gt.s32.totalorder %v1253_v53, 0  ;;  %v3865_v57 = vpop.permute.xlu1 %868 }
 0x451   : > { %v3847_v19 = vmul.u32.u64.low %v3784_v15, %v1187_v7  ;;  %v3848_v33 = vmul.u32.u64.high %v3784_v15, %v1187_v7, %v3847_v19  ;;  %v1099_v8 = vshrl.u32 %v1098_v31, 30  ;;  %v1179_v25 = vsel %vm1173_vm3, %v1176_v61, %v1178_v2 }
 0x452   : > { %v1255_v9 = vsel %vm1254_vm6, %v1253_v53, 0  ;;  %v1198_v6 = vadd.s32 1, %v3844_v12  ;;  %v1250_v0 = vand.u32 8388607, %v1243_v16  ;;  %v1195_v42 = vmul.u32 %v3784_v15, %v1179_v25  ;;  %v3132_v15 = vld [vmem:[%s3454_s17] sm:$0xff] }
 0x453   : > { %v1100_v21 = vshll.u32 %v1099_v8, 30  ;;  %v1257_v27 = vand.u32 31, %v1255_v9  ;;  %vm1197_vm7 = vc.u32 %v3848_v33, %v3843_v11  ;;  %v3860_v48 = vadd.f32 %v3131_v23, %v999_v1 }
 0x454   : > { %v967_v49 = vadd.f32 %v3735_v26, %v839_v40  ;;  %v1199_v28 = vsel %vm1197_vm7, %v1198_v6, %v3844_v12  ;;  %v1251_v13 = vor.u32 8388608, %v1250_v0  ;;  %v1123_v18 = vsub.s32 4, %v1099_v8 }
 0x455   : > { %v1101_v14 = vsub.s32 %v1097_v59, %v1100_v21  ;;  %v1200_v52 = vadd.s32 %v1199_v28, %v1195_v42  ;;  %v1258_v47 = vsub.s32 32, %v1257_v27  ;;  %v1349_v10 = vand.u32 2139095040, %v3860_v48 }
 0x456   : > { %v3868_v61 = vadd.f32 %v3132_v15, %v967_v49  ;;  %v3871_v62 = vadd.f32 %v3737_v32, %v839_v40  ;;  %v1346_v2 = vand.u32 2147483647, %v3860_v48  ;;  %v3885_v63 = vadd.f32 %v3770_v58, %v3865_v57 }
 0x457   : > { %v1103_v17 = vsub.s32 0, %v1101_v14  ;;  %v1201_v55 = vadd.s32 536870912, %v1200_v52  ;;  %v1093_v32 = vadd.s32 %v3815_v41, %v3812_v43  ;;  %v1261_v53 = vshrl.u32 %v3279_v20, %v1258_v47 }
 0x458   : > { %v3890_v31 = vshll.u32 %v1251_v13, 8  ;;  %v1124_v46 = vsel %vm1039_vm8, %v1123_v18, %v1099_v8  ;;  %v3895_v12 = vshrl.u32 %v1255_v9, 5  ;;  %v1350_v19 = vshrl.u32 %v1349_v10, 23 }
 0x459   : > { %v2859_v26 = vmin.u32 %v1103_v17, %v1101_v14  ;;  %v3880_v3 = vshrl.u32 %v1201_v55, 30  ;;  %v1260_v58 = vshll.u32 %v3278_v29, %v1257_v27  ;;  %v1264_v25 = vshrl.u32 %v3280_v54, %v1258_v47 }
 0x45a   : > { %v1270_v43 = vshrl.u32 %v3282_v4, %v1258_v47  ;;  %v1196_v41 = vadd.s32 %v3843_v11, %v3848_v33  ;;  %v1263_v6 = vshll.u32 %v3279_v20, %v1257_v27  ;;  %v1267_v8 = vshrl.u32 %v3281_v51, %v1258_v47 }
 0x45b   : > { %v1105_v5 = vclz %v2859_v26  ;;  %v1203_v7 = vshll.u32 %v3880_v3, 30  ;;  %v3907_v9 = vsel %vm3876_vm9, 0, %v1124_v46  ;;  %v1262_v0 = vor.u32 %v1261_v53, %v1260_v58 }
 0x45c   : > { %v1269_v40 = vshll.u32 %v3281_v51, %v1257_v27  ;;  %v1266_v49 = vshll.u32 %v3280_v54, %v1257_v27  ;;  %v1273_v11 = vshrl.u32 %v3283_v39, %v1258_v47  ;;  %v1259_v18 = vshrl.u32 %v3278_v29, %v1258_v47 }
 0x45d   : > { %v2860_v1 = vadd.s32 4294967294, %v1105_v5  ;;  %v3901_v21 = vsub.s32 %v1200_v52, %v1203_v7  ;;  %v1265_v52 = vor.u32 %v1264_v25, %v1263_v6  ;;  %v1272_v10 = vshll.u32 %v3282_v4, %v1257_v27 }
 0x45e   : > { %v1271_v17 = vor.u32 %v1270_v43, %v1269_v40  ;;  %v1268_v55 = vor.u32 %v1267_v8, %v1266_v49  ;;  %v1226_v53 = vsub.s32 4, %v3880_v3  ;;  %vm1275_vm11 = vcmp.lt.s32.totalorder %v3895_v12, 1 }
 0x45f   : > { %vm2861_vm10 = vcmp.lt.s32.totalorder %v2860_v1, 0  ;;  %v1206_v23 = vsub.s32 0, %v3901_v21  ;;  %v1274_v7 = vor.u32 %v1273_v11, %v1272_v10  ;;  %vm1278_vm12 = vcmp.lt.s32.totalorder %v3895_v12, 4 }
 0x460   : > { %v1108_v42 = vsel %vm2861_vm10, 0, %v2860_v1  ;;  %v1283_v25 = vsel %vm1275_vm11, %v1262_v0, %v1265_v52  ;;  %v1284_v47 = vsel %vm1278_vm12, %v1271_v17, 920167782  ;;  %vm1276_vm13 = vcmp.lt.s32.totalorder %v3895_v12, 2 }
 0x461   : > { %v1109_v33 = vsub.s32 32, %v1108_v42  ;;  %v1113_v28 = vsub.s32 4294967266, %v1108_v42  ;;  %v2863_v13 = vmin.u32 %v1206_v23, %v3901_v21  ;;  %v1110_v15 = vshll.u32 %v1101_v14, %v1108_v42 }
 0x462   : > { %vm1277_vm14 = vcmp.lt.s32.totalorder %v3895_v12, 3  ;;  %v1279_v14 = vsel %vm1275_vm11, %v1259_v18, %v1262_v0  ;;  %vm3926_vm15 = vcmp.le.f32.partialorder %v1140_v50, 0.7853982  ;;  %v1280_v6 = vsel %vm1278_vm12, %v1268_v55, 2102212464 }
 0x463   : > { %v1111_v26 = vshrl.u32 %v1093_v32, %v1109_v33  ;;  %v1114_v5 = vadd.s32 127, %v1113_v28  ;;  %v1208_v46 = vclz %v2863_v13  ;;  %v1285_v8 = vsel %vm1277_vm14, %v1268_v55, %v1284_v47 }
 0x464   : > { %v1287_v40 = vsel %vm1275_vm11, %v1265_v52, %v1268_v55  ;;  %v1286_v23 = vsel %vm1276_vm13, %v1283_v25, %v1285_v8  ;;  %v1288_v0 = vsel %vm1278_vm12, %v1274_v7, 1326507024  ;;  %v2870_v33 = vadd.s32 4294967169, %v1350_v19 }
 0x465   : > { %v1112_v1 = vor.u32 %v1111_v26, %v1110_v15  ;;  %v1115_v58 = vshll.u32 %v1114_v5, 23  ;;  %v2864_v27 = vadd.s32 4294967294, %v1208_v46  ;;  %v1289_v11 = vsel %vm1277_vm14, %v1271_v17, %v1288_v0 }
 0x466   : > { %v1281_v18 = vsel %vm1277_vm14, %v1265_v52, %v1280_v6  ;;  %v1290_v55 = vsel %vm1276_vm13, %v1287_v40, %v1289_v11  ;;  %v3950_v17 = vmul.u32.u64.low %v3890_v31, %v1286_v23  ;;  %v3951_v19 = vmul.u32.u64.high %v3890_v31, %v1286_v23, %v3950_v17 }
 0x467   : > { %v1116_v32 = vor.u32 4788187, %v1115_v58  ;;  %v1119_v42 = vcvt.s32.f32 %v1112_v1  ;;  %vm2865_vm1 = vcmp.lt.s32.totalorder %v2864_v27, 0  ;;  %v3953_v1 = vpop.permute.xlu1 %873  ;;  %v1970_v52 = vadd.s32 3, %v3907_v9 }
 0x468   : > { %v1211_v50 = vsel %vm2865_vm1, 0, %v2864_v27  ;;  %v3946_v26 = vmul.u32.u64.low %v3890_v31, %v1290_v55  ;;  %v3947_v5 = vmul.u32.u64.high %v3890_v31, %v1290_v55, %v3946_v26  ;;  %v1227_v25 = vsel %vm1142_vm0, %v1226_v53, %v3880_v3 }
 0x469   : > { %v1117_v49 = vand.u32 2147483647, %v1116_v32  ;;  %v1212_v28 = vsub.s32 32, %v1211_v50  ;;  %v1216_v13 = vsub.s32 4294967266, %v1211_v50  ;;  %v1213_v15 = vshll.u32 %v3901_v21, %v1211_v50 }
 0x46a   : > { %v1356_v21 = vadd.s32 1, %v2870_v33  ;;  %v1353_v32 = vand.u32 8388607, %v1346_v2  ;;  %v3966_v8 = vand.u32 3, %v3907_v9  ;;  %vm1300_vm2 = vc.u32 %v3947_v5, %v3950_v17 }
 0x46b   : > { %v1120_v10 = vmul.f32 %v1119_v42, %v1117_v49  ;;  %v1214_v46 = vshrl.u32 %v1196_v41, %v1212_v28  ;;  %v1217_v7 = vadd.s32 127, %v1216_v13  ;;  %v1282_v41 = vsel %vm1276_vm13, %v1279_v14, %v1281_v18  ;;  %v3979_v49 = vpop.permute.xlu1 %843  ;;  %v3133_v13 = vld [vmem:[%s3454_s17 + $0x8] sm:$0xff] }
 0x46c   : > { %vm1357_vm3 = vcmp.gt.s32.totalorder %v1356_v21, 0  ;;  %v1229_v12 = vsel %vm3926_vm15, 0, %v1227_v25  ;;  %v1301_v14 = vadd.s32 1, %v3951_v19  ;;  %v3975_v40 = vand.u32 3, %v1970_v52 }
 0x46d   : > { %v1121_v58 = vxor.u32 2147483648, %v1120_v10  ;;  %v1215_v47 = vor.u32 %v1214_v46, %v1213_v15  ;;  %v1218_v27 = vshll.u32 %v1217_v7, 23  ;;  %v1298_v9 = vmul.u32 %v3890_v31, %v1282_v41 }
 0x46e   : > { %v1358_v42 = vsel %vm1357_vm3, %v1356_v21, 0  ;;  %v1302_v59 = vsel %vm1300_vm2, %v1301_v14, %v3951_v19  ;;  %v2074_v50 = vadd.s32 3, %v1229_v12  ;;  %v1354_v33 = vor.u32 8388608, %v1353_v32 }
 0x46f   : > { %v1122_v6 = vsel %vm1039_vm8, %v1121_v58, %v1120_v10  ;;  %v1219_v53 = vor.u32 4788187, %v1218_v27  ;;  %v1222_v0 = vcvt.s32.f32 %v1215_v47  ;;  %v1303_v11 = vadd.s32 %v1302_v59, %v1298_v9  ;;  %v3134_v10 = vld [vmem:[%s3454_s17 + $0x60] sm:$0xff] }
 0x470   : > { %v1125_v3 = vsel %vm3876_vm9, %v3752_v44, %v1122_v6  ;;  %v1360_v28 = vand.u32 31, %v1358_v42  ;;  %v3983_v18 = vadd.f32 %v3133_v13, %v3871_v62  ;;  %v3987_v55 = vadd.f32 %v3739_v34, %v3979_v49 }
 0x471   : > { %3099 = vcosq.f32 %v1125_v3  ;;  %v1220_v23 = vand.u32 2147483647, %v1219_v53  ;;  %v3991_v15 = vadd.f32 %v3134_v10, %v3885_v63  ;;  %vm1135_vm4 = vcmp.eq.s32.totalorder %v3966_v8, 2 }
 0x472   : > { %3101 = vsinq.f32 %v1125_v3  ;;  %v1304_v26 = vadd.s32 536870912, %v1303_v11  ;;  %v3994_v46 = vsub.s32 32, %v1360_v28  ;;  %v3998_v7 = vadd.f32 %v3775_v60, %v3865_v57 }
 0x473   : > { %v1223_v31 = vmul.f32 %v1222_v0, %v1220_v23  ;;  %vm1132_vm5 = vcmp.eq.s32.totalorder %v3966_v8, 0  ;;  %vm1973_vm6 = vcmp.eq.s32.totalorder %v3975_v40, 0  ;;  %vm1976_vm7 = vcmp.eq.s32.totalorder %v3975_v40, 2 }
 0x474   : > { %v4003_v62 = vshrl.u32 %v1358_v42, 5  ;;  %vm1131_vm8 = vcmp.lt.s32.totalorder %v3966_v8, 2  ;;  %vm1972_vm9 = vcmp.lt.s32.totalorder %v3975_v40, 2  ;;  %v4007_v63 = vand.u32 3, %v1229_v12 }
 0x475   : > { %v1224_v34 = vxor.u32 2147483648, %v1223_v31  ;;  %v4009_v19 = vand.u32 3, %v2074_v50  ;;  %vm1245_vm10 = vcmp.lt.s32.totalorder %v3773_v30, 0  ;;  %v1305_v60 = vshrl.u32 %v1304_v26, 30 }
 0x476   : > { %v4012_v57 = vshll.u32 %v1354_v33, 8  ;;  %vm1129_vm11 = vweird.f32 %v3752_v44  ;;  %v4018_v52 = vadd.s32 %v3950_v17, %v3947_v5  ;;  %v1449_v25 = vand.u32 2147483647, %v3991_v15 }
 0x477   : > { %v1225_v58 = vsel %vm1142_vm0, %v1224_v34, %v1223_v31  ;;  %v1452_v21 = vand.u32 2139095040, %v3991_v15  ;;  %v1306_v27 = vshll.u32 %v1305_v60, 30  ;;  %v1363_v41 = vshll.u32 %v3278_v29, %v1360_v28 }
 0x478   : > { %v1228_v47 = vsel %vm3926_vm15, %v3755_v45, %v1225_v58  ;;  %v1364_v32 = vshrl.u32 %v3279_v20, %v3994_v46  ;;  %v1366_v6 = vshll.u32 %v3279_v20, %v1360_v28  ;;  %v1367_v5 = vshrl.u32 %v3280_v54, %v3994_v46 }
 0x479   : > { %3103 = vcosq.f32 %v1228_v47  ;;  %v1373_v17 = vshrl.u32 %v3282_v4, %v3994_v46  ;;  %vm1378_vm0 = vcmp.lt.s32.totalorder %v4003_v62, 1  ;;  %vm4037_vm12 = vcmp.le.f32.partialorder %v1243_v16, 0.7853982 }
 0x47a   : > { %3105 = vsinq.f32 %v1228_v47  ;;  %v4041_v53 = vsub.s32 %v1303_v11, %v1306_v27  ;;  %v1369_v12 = vshll.u32 %v3280_v54, %v1360_v28  ;;  %v1370_v14 = vshrl.u32 %v3281_v51, %v3994_v46 }
 0x47b   : > { %v3100_v3 = vpop.eup %3099  ;;  %v1329_v23 = vsub.s32 4, %v1305_v60  ;;  %v1372_v0 = vshll.u32 %v3281_v51, %v1360_v28  ;;  %v1376_v59 = vshrl.u32 %v3283_v39, %v3994_v46  ;;  %v1365_v33 = vor.u32 %v1364_v32, %v1363_v41 }
 0x47c   : > { %v3102_v9 = vpop.eup %3101  ;;  %v1136_v42 = vxor.u32 2147483648, %v3100_v3  ;;  %v1309_v16 = vsub.s32 0, %v4041_v53  ;;  %v1375_v11 = vshll.u32 %v3282_v4, %v1360_v28  ;;  %vm1238_vm13 = vcmp.eq.s32.totalorder %v4007_v63, 2 }
 0x47d   : > { %v1133_v50 = vxor.u32 2147483648, %v3102_v9  ;;  %vm2080_vm14 = vcmp.eq.s32.totalorder %v4009_v19, 2  ;;  %v4061_v10 = vor.u32 %v1367_v5, %v1366_v6  ;;  %v1374_v26 = vor.u32 %v1373_v17, %v1372_v0 }
 0x47e   : > { %v1137_v13 = vsel %vm1135_vm4, %v1136_v42, %v3102_v9  ;;  %v1978_v31 = vsel %vm1976_vm7, %v1136_v42, %v3102_v9  ;;  %vm1235_vm15 = vcmp.eq.s32.totalorder %v4007_v63, 0  ;;  %vm2077_vm1 = vcmp.eq.s32.totalorder %v4009_v19, 0 }
 0x47f   : > { %v1134_v34 = vsel %vm1132_vm5, %v3100_v3, %v1133_v50  ;;  %v1975_v28 = vsel %vm1973_vm6, %v3100_v3, %v1133_v50  ;;  %v2867_v58 = vmin.u32 %v1309_v16, %v4041_v53  ;;  %v1371_v47 = vor.u32 %v1370_v14, %v1369_v12 }
 0x480   : > { %v1138_v27 = vsel %vm1131_vm8, %v1134_v34, %v1137_v13  ;;  %v1979_v41 = vsel %vm1972_vm9, %v1975_v28, %v1978_v31  ;;  %vm1234_vm2 = vcmp.lt.s32.totalorder %v4007_v63, 2  ;;  %vm2076_vm3 = vcmp.lt.s32.totalorder %v4009_v19, 2 }
 0x481   : > { %v1330_v32 = vsel %vm1245_vm10, %v1329_v23, %v1305_v60  ;;  %v1377_v6 = vor.u32 %v1376_v59, %v1375_v11  ;;  %v1139_v5 = vsel %vm1129_vm11, nan, %v1138_v27  ;;  %v1980_v17 = vsel %vm1129_vm11, nan, %v1979_v41 }
 0x482   : > { %vm1232_vm4 = vweird.f32 %v3755_v45  ;;  %v1311_v8 = vclz %v2867_v58  ;;  %vm1381_vm5 = vcmp.lt.s32.totalorder %v4003_v62, 4  ;;  %v1861_v40 = vmul.f32 %v1139_v5, %v3868_v61 }
 0x483   : > { %v2709_v3 = vmul.f32 %v1980_v17, %v3868_v61  ;;  %vm1379_vm6 = vcmp.lt.s32.totalorder %v4003_v62, 2  ;;  %v1387_v60 = vsel %vm1381_vm5, %v1374_v26, 920167782  ;;  %v1362_v14 = vshrl.u32 %v3278_v29, %v3994_v46  ;;  %v3104_v9 = vpop.eup %3103 }
 0x484   : > { %v2868_v12 = vadd.s32 4294967294, %v1311_v8  ;;  %vm1380_vm7 = vcmp.lt.s32.totalorder %v4003_v62, 3  ;;  %v1386_v44 = vsel %vm1378_vm0, %v1365_v33, %v4061_v10  ;;  %1869 = vst [vmem:[%s4096_s13] sm:$0xff] %v1861_v40  ;;  %v1332_v61 = vsel %vm4037_vm12, 0, %v1330_v32  ;;  %v3106_v0 = vpop.eup %3105 }
 0x485   : > { %2717 = vst [vmem:[%s4096_s13 + $0x40] sm:$0xff] %v2709_v3  ;;  %v1388_v42 = vsel %vm1380_vm7, %v1371_v47, %v1387_v60  ;;  %v1390_v46 = vsel %vm1378_vm0, %v4061_v10, %v1371_v47  ;;  %v1391_v23 = vsel %vm1381_vm5, %v1377_v6, 1326507024  ;;  %v1239_v59 = vxor.u32 2147483648, %v3104_v9 }
 0x486   : > { %vm2869_vm8 = vcmp.lt.s32.totalorder %v2868_v12, 0  ;;  %v1382_v50 = vsel %vm1378_vm0, %v1362_v14, %v1365_v33  ;;  %v1392_v16 = vsel %vm1380_vm7, %v1374_v26, %v1391_v23  ;;  %v1236_v11 = vxor.u32 2147483648, %v3106_v0 }
 0x487   : > { %v1314_v13 = vsel %vm2869_vm8, 0, %v2868_v12  ;;  %v1383_v31 = vsel %vm1381_vm5, %v1371_v47, 2102212464  ;;  %v1389_v34 = vsel %vm1379_vm6, %v1386_v44, %v1388_v42  ;;  %v1240_v28 = vsel %vm1238_vm13, %v1239_v59, %v3106_v0 }
 0x488   : > { %v2082_v58 = vsel %vm2080_vm14, %v1239_v59, %v3106_v0  ;;  %v1315_v27 = vsub.s32 32, %v1314_v13  ;;  %v1393_v33 = vsel %vm1379_vm6, %v1390_v46, %v1392_v16  ;;  %v1237_v26 = vsel %vm1235_vm15, %v3104_v9, %v1236_v11 }
 0x489   : > { %v2079_v41 = vsel %vm2077_vm1, %v3104_v9, %v1236_v11  ;;  %v1319_v47 = vsub.s32 4294967266, %v1314_v13  ;;  %v1453_v32 = vshrl.u32 %v1452_v21, 23  ;;  %v1241_v6 = vsel %vm1234_vm2, %v1237_v26, %v1240_v28  ;;  %v3136_v11 = vld [vmem:[%s3454_s17 + $0x10] sm:$0xff] }
 0x48a   : > { %v2083_v5 = vsel %vm2076_vm3, %v2079_v41, %v2082_v58  ;;  %v1316_v17 = vshll.u32 %v4041_v53, %v1314_v13  ;;  %v1317_v8 = vshrl.u32 %v4018_v52, %v1315_v27  ;;  %v1242_v40 = vsel %vm1232_vm4, nan, %v1241_v6 }
 0x48b   : > { %v2084_v3 = vsel %vm1232_vm4, nan, %v2083_v5  ;;  %v1320_v60 = vadd.s32 127, %v1319_v47  ;;  %v2874_v21 = vadd.s32 4294967169, %v1453_v32  ;;  %v1862_v63 = vmul.f32 %v1242_v40, %v3983_v18 }
 0x48c   : > { %v2710_v12 = vmul.f32 %v2084_v3, %v3983_v18  ;;  %v1318_v19 = vor.u32 %v1317_v8, %v1316_v17  ;;  %v1384_v53 = vsel %vm1380_vm7, %v4061_v10, %v1383_v31  ;;  %v2178_v9 = vadd.s32 3, %v1332_v61  ;;  %v3135_v10 = vld [vmem:[%s3454_s17 + $0x68] sm:$0xff] }
 0x48d   : > { %v1321_v52 = vshll.u32 %v1320_v60, 23  ;;  %v4145_v14 = vmul.u32.u64.low %v4012_v57, %v1393_v33  ;;  %v4146_v44 = vmul.u32.u64.high %v4012_v57, %v1393_v33, %v4145_v14  ;;  %v1459_v45 = vadd.s32 1, %v2874_v21  ;;  %1870 = vst [vmem:[%s4096_s13 + $0x8] sm:$0xff] %v1862_v63 }
 0x48e   : > { %2718 = vst [vmem:[%s4096_s13 + $0x48] sm:$0xff] %v2710_v12  ;;  %v4151_v42 = vmul.u32.u64.low %v4012_v57, %v1389_v34  ;;  %v4152_v46 = vmul.u32.u64.high %v4012_v57, %v1389_v34, %v4151_v42  ;;  %v4157_v23 = vand.u32 8388607, %v1449_v25  ;;  %v4161_v0 = vadd.f32 %v3135_v10, %v3998_v7 }
 0x48f   : > { %v1322_v18 = vor.u32 4788187, %v1321_v52  ;;  %vm1460_vm9 = vcmp.gt.s32.totalorder %v1459_v45, 0  ;;  %v1385_v59 = vsel %vm1379_vm6, %v1382_v50, %v1384_v53  ;;  %v4167_v13 = vadd.f32 %v3136_v11, %v3987_v55 }
 0x490   : > { %v1461_v16 = vsel %vm1460_vm9, %v1459_v45, 0  ;;  %v1325_v34 = vcvt.s32.f32 %v1318_v19  ;;  %vm1403_vm11 = vc.u32 %v4146_v44, %v4151_v42  ;;  %v4171_v28 = vand.u32 3, %v1332_v61 }
 0x491   : > { %v1323_v31 = vand.u32 2147483647, %v1322_v18  ;;  %v4173_v58 = vand.u32 3, %v2178_v9  ;;  %v1404_v7 = vadd.s32 1, %v4152_v46  ;;  %v1463_v27 = vand.u32 31, %v1461_v16 }
 0x492   : > { %v1401_v62 = vmul.u32 %v4012_v57, %v1385_v59  ;;  %v1457_v50 = vor.u32 8388608, %v4157_v23  ;;  %v1555_v55 = vand.u32 2139095040, %v4161_v0  ;;  %v1462_v41 = vshrl.u32 %v1461_v16, 5 }
 0x493   : > { %v1326_v33 = vmul.f32 %v1325_v34, %v1323_v31  ;;  %v1405_v26 = vsel %vm1403_vm11, %v1404_v7, %v4152_v46  ;;  %v1464_v47 = vsub.s32 32, %v1463_v27  ;;  %v1466_v32 = vshll.u32 %v3278_v29, %v1463_v27 }
 0x494   : > { %v1406_v6 = vadd.s32 %v1405_v26, %v1401_v62  ;;  %v1469_v5 = vshll.u32 %v3279_v20, %v1463_v27  ;;  %v1472_v17 = vshll.u32 %v3280_v54, %v1463_v27  ;;  %v1475_v3 = vshll.u32 %v3281_v51, %v1463_v27 }
 0x495   : > { %v1327_v61 = vxor.u32 2147483648, %v1326_v33  ;;  %v1467_v8 = vshrl.u32 %v3279_v20, %v1464_v47  ;;  %v1470_v57 = vshrl.u32 %v3280_v54, %v1464_v47  ;;  %v1473_v40 = vshrl.u32 %v3281_v51, %v1464_v47 }
 0x496   : > { %v1407_v21 = vadd.s32 536870912, %v1406_v6  ;;  %v1476_v63 = vshrl.u32 %v3282_v4, %v1464_v47  ;;  %v1478_v12 = vshll.u32 %v3282_v4, %v1463_v27  ;;  %vm1348_vm0 = vcmp.lt.s32.totalorder %v3860_v48, 0 }
 0x497   : > { %v1328_v60 = vsel %vm1245_vm10, %v1327_v61, %v1326_v33  ;;  %v1468_v53 = vor.u32 %v1467_v8, %v1466_v32  ;;  %v1471_v52 = vor.u32 %v1470_v57, %v1469_v5  ;;  %v1474_v14 = vor.u32 %v1473_v40, %v1472_v17 }
 0x498   : > { %v1331_v19 = vsel %vm4037_vm12, %v3773_v30, %v1328_v60  ;;  %v1408_v45 = vshrl.u32 %v1407_v21, 30  ;;  %v1477_v9 = vor.u32 %v1476_v63, %v1475_v3  ;;  %v1479_v46 = vshrl.u32 %v3283_v39, %v1464_v47 }
 0x499   : > { %3107 = vcosq.f32 %v1331_v19  ;;  %vm1481_vm10 = vcmp.lt.s32.totalorder %v1462_v41, 1  ;;  %vm1482_vm13 = vcmp.lt.s32.totalorder %v1462_v41, 2  ;;  %v1556_v18 = vshrl.u32 %v1555_v55, 23 }
 0x49a   : > { %3109 = vsinq.f32 %v1331_v19  ;;  %vm4198_vm14 = vcmp.le.f32.partialorder %v1346_v2, 0.7853982  ;;  %v1409_v43 = vshll.u32 %v1408_v45, 30  ;;  %v1480_v10 = vor.u32 %v1479_v46, %v1478_v12 }
 0x49b   : > { %vm1484_vm12 = vcmp.lt.s32.totalorder %v1462_v41, 4  ;;  %v1489_v59 = vsel %vm1481_vm10, %v1468_v53, %v1471_v52  ;;  %v1465_v16 = vshrl.u32 %v3278_v29, %v1464_v47  ;;  %vm1483_vm15 = vcmp.lt.s32.totalorder %v1462_v41, 3 }
 0x49c   : > { %v1486_v11 = vsel %vm1484_vm12, %v1474_v14, 2102212464  ;;  %v1490_v31 = vsel %vm1484_vm12, %v1477_v9, 920167782  ;;  %v4204_v34 = vsub.s32 %v1406_v6, %v1409_v43  ;;  %v1432_v7 = vsub.s32 4, %v1408_v45 }
 0x49d   : > { %v1491_v27 = vsel %vm1483_vm15, %v1474_v14, %v1490_v31  ;;  %v1493_v33 = vsel %vm1481_vm10, %v1471_v52, %v1474_v14  ;;  %v1485_v2 = vsel %vm1481_vm10, %v1465_v16, %v1468_v53  ;;  %v1494_v55 = vsel %vm1484_vm12, %v1480_v10, 1326507024 }
 0x49e   : > { %v1492_v62 = vsel %vm1482_vm13, %v1489_v59, %v1491_v27  ;;  %v1497_v26 = vshll.u32 %v1457_v50, 8  ;;  %vm1337_vm1 = vcmp.lt.s32.totalorder %v4171_v28, 2  ;;  %v1412_v32 = vsub.s32 0, %v4204_v34 }
 0x49f   : > { %v1487_v47 = vsel %vm1483_vm15, %v1471_v52, %v1486_v11  ;;  %v1495_v61 = vsel %vm1483_vm15, %v1477_v9, %v1494_v55  ;;  %v2878_v5 = vadd.s32 4294967169, %v1556_v18  ;;  %vm1335_vm2 = vweird.f32 %v3773_v30 }
 0x4a0   : > { %vm1338_vm3 = vcmp.eq.s32.totalorder %v4171_v28, 0  ;;  %v1496_v6 = vsel %vm1482_vm13, %v1493_v33, %v1495_v61  ;;  %v4214_v17 = vmul.u32.u64.low %v1497_v26, %v1492_v62  ;;  %v4215_v8 = vmul.u32.u64.high %v1497_v26, %v1492_v62, %v4214_v17 }
 0x4a1   : > { %vm1341_vm4 = vcmp.eq.s32.totalorder %v4171_v28, 2  ;;  %vm2180_vm5 = vcmp.lt.s32.totalorder %v4173_v58, 2  ;;  %v2871_v50 = vmin.u32 %v1412_v32, %v4204_v34  ;;  %v1433_v57 = vsel %vm1348_vm0, %v1432_v7, %v1408_v45 }
 0x4a2   : > { %vm2181_vm6 = vcmp.eq.s32.totalorder %v4173_v58, 0  ;;  %v1488_v40 = vsel %vm1482_vm13, %v1485_v2, %v1487_v47  ;;  %v4225_v3 = vmul.u32.u64.low %v1497_v26, %v1496_v6  ;;  %v4226_v60 = vmul.u32.u64.high %v1497_v26, %v1496_v6, %v4225_v3 }
 0x4a3   : > { %v3108_v21 = vpop.eup %3107  ;;  %vm2184_vm7 = vcmp.eq.s32.totalorder %v4173_v58, 2  ;;  %v1414_v63 = vclz %v2871_v50  ;;  %v1562_v12 = vadd.s32 1, %v2878_v5  ;;  %v4231_v19 = vadd.f32 %v3821_v24, %v3953_v1 }
 0x4a4   : > { %v3110_v53 = vpop.eup %3109  ;;  %v1342_v52 = vxor.u32 2147483648, %v3108_v21  ;;  %v1402_v14 = vadd.s32 %v4151_v42, %v4146_v44  ;;  %v1435_v41 = vsel %vm4198_vm14, 0, %v1433_v57  ;;  %v1552_v45 = vand.u32 2147483647, %v4161_v0 }
 0x4a5   : > { %v1339_v9 = vxor.u32 2147483648, %v3110_v53  ;;  %v2872_v46 = vadd.s32 4294967294, %v1414_v63  ;;  %v1504_v18 = vmul.u32 %v1497_v26, %v1488_v40  ;;  %v1507_v43 = vadd.s32 1, %v4215_v8  ;;  %v4268_v40 = vpop.permute.xlu0 %848  ;;  %v3137_v63 = vld [vmem:[%s3454_s17 + $0x18] sm:$0xff] }
 0x4a6   : > { %v1343_v10 = vsel %vm1341_vm4, %v1342_v52, %v3110_v53  ;;  %v2186_v24 = vsel %vm2184_vm7, %v1342_v52, %v3110_v53  ;;  %vm1506_vm8 = vc.u32 %v4226_v60, %v4214_v17  ;;  %vm1563_vm9 = vcmp.gt.s32.totalorder %v1562_v12, 0 }
 0x4a7   : > { %v1340_v44 = vsel %vm1338_vm3, %v3108_v21, %v1339_v9  ;;  %v2183_v42 = vsel %vm2181_vm6, %v3108_v21, %v1339_v9  ;;  %vm2873_vm11 = vcmp.lt.s32.totalorder %v2872_v46, 0  ;;  %v1508_v59 = vsel %vm1506_vm8, %v1507_v43, %v4215_v8 }
 0x4a8   : > { %v1344_v16 = vsel %vm1337_vm1, %v1340_v44, %v1343_v10  ;;  %v2187_v11 = vsel %vm2180_vm5, %v2183_v42, %v2186_v24  ;;  %v1417_v31 = vsel %vm2873_vm11, 0, %v2872_v46  ;;  %v1509_v7 = vadd.s32 %v1508_v59, %v1504_v18 }
 0x4a9   : > { %v1345_v27 = vsel %vm1335_vm2, nan, %v1344_v16  ;;  %v2188_v33 = vsel %vm1335_vm2, nan, %v2187_v11  ;;  %v1418_v2 = vsub.s32 32, %v1417_v31  ;;  %v1559_v62 = vand.u32 8388607, %v1552_v45 }
 0x4aa   : > { %v1863_v28 = vmul.f32 %v1345_v27, %v4167_v13  ;;  %v2711_v55 = vmul.f32 %v2188_v33, %v4167_v13  ;;  %v1422_v58 = vsub.s32 4294967266, %v1417_v31  ;;  %v1510_v26 = vadd.s32 536870912, %v1509_v7 }
 0x4ab   : > { %v975_v32 = vadd.f32 %v3741_v35, %v3979_v49  ;;  %v1420_v47 = vshrl.u32 %v1402_v14, %v1418_v2  ;;  %v1564_v61 = vsel %vm1563_vm9, %v1562_v12, 0  ;;  %v1009_v30 = vadd.f32 %v3778_v56, %v3953_v1  ;;  %v3138_v1 = vld [vmem:[%s3454_s17 + $0x70] sm:$0xff] }
 0x4ac   : > { %1871 = vst [vmem:[%s4096_s13 + $0x10] sm:$0xff] %v1863_v28  ;;  %2719 = vst [vmem:[%s4096_s13 + $0x50] sm:$0xff] %v2711_v55  ;;  %v1419_v5 = vshll.u32 %v4204_v34, %v1417_v31  ;;  %v1423_v6 = vadd.s32 127, %v1422_v58  ;;  %v1511_v8 = vshrl.u32 %v1510_v26, 30  ;;  %v1566_v13 = vand.u32 31, %v1564_v61 }
 0x4ad   : > { %v2282_v50 = vadd.s32 3, %v1435_v41  ;;  %v1560_v57 = vor.u32 8388608, %v1559_v62  ;;  %v4271_v12 = vadd.f32 %v3137_v63, %v975_v32  ;;  %v4275_v56 = vadd.f32 %v3743_v36, %v4268_v40 }
 0x4ae   : > { %v1421_v35 = vor.u32 %v1420_v47, %v1419_v5  ;;  %v1424_v49 = vshll.u32 %v1423_v6, 23  ;;  %v1512_v3 = vshll.u32 %v1511_v8, 30  ;;  %v1567_v21 = vsub.s32 32, %v1566_v13 }
 0x4af   : > { %v4278_v34 = vadd.f32 %v3138_v1, %v1009_v30  ;;  %v4280_v52 = vand.u32 3, %v1435_v41  ;;  %vm1451_vm10 = vcmp.lt.s32.totalorder %v3991_v15, 0  ;;  %v4283_v9 = vand.u32 3, %v2282_v50 }
 0x4b0   : > { %v1425_v53 = vor.u32 4788187, %v1424_v49  ;;  %v1513_v14 = vsub.s32 %v1509_v7, %v1512_v3  ;;  %v1505_v46 = vadd.s32 %v4214_v17, %v4226_v60  ;;  %v1535_v18 = vsub.s32 4, %v1511_v8 }
 0x4b1   : > { %v4287_v43 = vshll.u32 %v1560_v57, 8  ;;  %v1428_v36 = vcvt.s32.f32 %v1421_v35  ;;  %v1576_v44 = vshrl.u32 %v3281_v51, %v1567_v21  ;;  %v1565_v42 = vshrl.u32 %v1564_v61, 5 }
 0x4b2   : > { %v1426_v10 = vand.u32 2147483647, %v1425_v53  ;;  %v1515_v24 = vsub.s32 0, %v1513_v14  ;;  %v1570_v41 = vshrl.u32 %v3279_v20, %v1567_v21  ;;  %v1573_v59 = vshrl.u32 %v3280_v54, %v1567_v21 }
 0x4b3   : > { %v1658_v16 = vand.u32 2139095040, %v4278_v34  ;;  %v1569_v7 = vshll.u32 %v3278_v29, %v1566_v13  ;;  %v1575_v17 = vshll.u32 %v3280_v54, %v1566_v13  ;;  %v1536_v60 = vsel %vm1451_vm10, %v1535_v18, %v1511_v8 }
 0x4b4   : > { %v1429_v11 = vmul.f32 %v1428_v36, %v1426_v10  ;;  %v2875_v31 = vmin.u32 %v1515_v24, %v1513_v14  ;;  %v1572_v27 = vshll.u32 %v3279_v20, %v1566_v13  ;;  %v1578_v33 = vshll.u32 %v3281_v51, %v1566_v13 }
 0x4b5   : > { %v1579_v2 = vshrl.u32 %v3282_v4, %v1567_v21  ;;  %v1577_v55 = vor.u32 %v1576_v44, %v1575_v17  ;;  %v1582_v58 = vshrl.u32 %v3283_v39, %v1567_v21  ;;  %v1571_v26 = vor.u32 %v1570_v41, %v1569_v7 }
 0x4b6   : > { %v1430_v62 = vxor.u32 2147483648, %v1429_v11  ;;  %v1517_v28 = vclz %v2875_v31  ;;  %v1574_v32 = vor.u32 %v1573_v59, %v1572_v27  ;;  %v1581_v61 = vshll.u32 %v3282_v4, %v1566_v13 }
 0x4b7   : > { %v1580_v47 = vor.u32 %v1579_v2, %v1578_v33  ;;  %v1568_v6 = vshrl.u32 %v3278_v29, %v1567_v21  ;;  %vm1584_vm13 = vcmp.lt.s32.totalorder %v1565_v42, 1  ;;  %vm1585_vm12 = vcmp.lt.s32.totalorder %v1565_v42, 2 }
 0x4b8   : > { %v1431_v30 = vsel %vm1348_vm0, %v1430_v62, %v1429_v11  ;;  %v2876_v5 = vadd.s32 4294967294, %v1517_v28  ;;  %v1583_v50 = vor.u32 %v1582_v58, %v1581_v61  ;;  %vm1587_vm15 = vcmp.lt.s32.totalorder %v1565_v42, 4 }
 0x4b9   : > { %v1434_v8 = vsel %vm4198_vm14, %v3860_v48, %v1431_v30  ;;  %vm4310_vm1 = vcmp.le.f32.partialorder %v1449_v25, 0.7853982  ;;  %vm1586_vm0 = vcmp.lt.s32.totalorder %v1565_v42, 3  ;;  %v1589_v13 = vsel %vm1587_vm15, %v1577_v55, 2102212464 }
 0x4ba   : > { %3111 = vcosq.f32 %v1434_v8  ;;  %vm2877_vm2 = vcmp.lt.s32.totalorder %v2876_v5, 0  ;;  %v1592_v49 = vsel %vm1584_vm13, %v1571_v26, %v1574_v32  ;;  %v1593_v23 = vsel %vm1587_vm15, %v1580_v47, 920167782 }
 0x4bb   : > { %3113 = vsinq.f32 %v1434_v8  ;;  %v1520_v35 = vsel %vm2877_vm2, 0, %v2876_v5  ;;  %v1588_v63 = vsel %vm1584_vm13, %v1568_v6, %v1571_v26  ;;  %v1590_v1 = vsel %vm1586_vm0, %v1574_v32, %v1589_v13 }
 0x4bc   : > { %v1521_v3 = vsub.s32 32, %v1520_v35  ;;  %v1525_v21 = vsub.s32 4294967266, %v1520_v35  ;;  %v1522_v25 = vshll.u32 %v1513_v14, %v1520_v35  ;;  %v1594_v53 = vsel %vm1586_vm0, %v1577_v55, %v1593_v23 }
 0x4bd   : > { %v1596_v18 = vsel %vm1584_vm13, %v1574_v32, %v1577_v55  ;;  %v1597_v10 = vsel %vm1587_vm15, %v1583_v50, 1326507024  ;;  %v1595_v44 = vsel %vm1585_vm12, %v1592_v49, %v1594_v53  ;;  %v1659_v14 = vshrl.u32 %v1658_v16, 23 }
 0x4be   : > { %v1523_v36 = vshrl.u32 %v1505_v46, %v1521_v3  ;;  %v1526_v24 = vadd.s32 127, %v1525_v21  ;;  %v1598_v41 = vsel %vm1586_vm0, %v1580_v47, %v1597_v10  ;;  %vm1438_vm14 = vweird.f32 %v3860_v48 }
 0x4bf   : > { %v1599_v59 = vsel %vm1585_vm12, %v1596_v18, %v1598_v41  ;;  %v4326_v11 = vmul.u32.u64.low %v4287_v43, %v1595_v44  ;;  %v4327_v31 = vmul.u32.u64.high %v4287_v43, %v1595_v44, %v4326_v11  ;;  %vm1440_vm3 = vcmp.lt.s32.totalorder %v4280_v52, 2 }
 0x4c0   : > { %v1524_v7 = vor.u32 %v1523_v36, %v1522_v25  ;;  %v1527_v17 = vshll.u32 %v1526_v24, 23  ;;  %v4331_v27 = vmul.u32.u64.low %v4287_v43, %v1599_v59  ;;  %v4332_v33 = vmul.u32.u64.high %v4287_v43, %v1599_v59, %v4331_v27 }
 0x4c1   : > { %vm1441_vm4 = vcmp.eq.s32.totalorder %v4280_v52, 0  ;;  %v1591_v46 = vsel %vm1585_vm12, %v1588_v63, %v1590_v1  ;;  %v2882_v2 = vadd.s32 4294967169, %v1659_v14  ;;  %vm1444_vm5 = vcmp.eq.s32.totalorder %v4280_v52, 2  ;;  %v3139_v14 = vld [vmem:[%s3454_s17 + $0x20] sm:$0xff] }
 0x4c2   : > { %vm2284_vm6 = vcmp.lt.s32.totalorder %v4283_v9, 2  ;;  %vm2285_vm7 = vcmp.eq.s32.totalorder %v4283_v9, 0  ;;  %v1528_v16 = vor.u32 4788187, %v1527_v17  ;;  %vm2288_vm8 = vcmp.eq.s32.totalorder %v4283_v9, 2 }
 0x4c3   : > { %v1538_v62 = vsel %vm4310_vm1, 0, %v1536_v60  ;;  %v1610_v28 = vadd.s32 1, %v4327_v31  ;;  %v1665_v55 = vadd.s32 1, %v2882_v2  ;;  %v1531_v42 = vcvt.s32.f32 %v1524_v7 }
 0x4c4   : > { %v3112_v58 = vpop.eup %3111  ;;  %v1529_v26 = vand.u32 2147483647, %v1528_v16  ;;  %v1607_v32 = vmul.u32 %v4287_v43, %v1591_v46  ;;  %vm1609_vm9 = vc.u32 %v4332_v33, %v4326_v11  ;;  %v1655_v5 = vand.u32 2147483647, %v4278_v34 }
 0x4c5   : > { %v3114_v47 = vpop.eup %3113  ;;  %v1445_v61 = vxor.u32 2147483648, %v3112_v58  ;;  %v1611_v30 = vsel %vm1609_vm9, %v1610_v28, %v4327_v31  ;;  %vm1666_vm11 = vcmp.gt.s32.totalorder %v1665_v55, 0  ;;  %v2386_v35 = vadd.s32 3, %v1538_v62 }
 0x4c6   : > { %v1442_v6 = vxor.u32 2147483648, %v3114_v47  ;;  %v1532_v60 = vmul.f32 %v1531_v42, %v1529_v26  ;;  %v1612_v8 = vadd.s32 %v1611_v30, %v1607_v32  ;;  %v1667_v50 = vsel %vm1666_vm11, %v1665_v55, 0 }
 0x4c7   : > { %v1446_v13 = vsel %vm1444_vm5, %v1445_v61, %v3114_v47  ;;  %v2290_v43 = vsel %vm2288_vm8, %v1445_v61, %v3114_v47  ;;  %v1669_v49 = vand.u32 31, %v1667_v50  ;;  %v1662_v53 = vand.u32 8388607, %v1655_v5 }
 0x4c8   : > { %v1443_v23 = vsel %vm1441_vm4, %v3112_v58, %v1442_v6  ;;  %v2287_v3 = vsel %vm2285_vm7, %v3112_v58, %v1442_v6  ;;  %v1533_v21 = vxor.u32 2147483648, %v1532_v60  ;;  %v1613_v63 = vadd.s32 536870912, %v1612_v8 }
 0x4c9   : > { %v1447_v1 = vsel %vm1440_vm3, %v1443_v23, %v1446_v13  ;;  %v2291_v25 = vsel %vm2284_vm6, %v2287_v3, %v2290_v43  ;;  %v1670_v18 = vsub.s32 32, %v1669_v49  ;;  %v4375_v59 = vand.u32 3, %v1538_v62 }
 0x4ca   : > { %v1448_v10 = vsel %vm1438_vm14, nan, %v1447_v1  ;;  %v2292_v36 = vsel %vm1438_vm14, nan, %v2291_v25  ;;  %v1534_v24 = vsel %vm1451_vm10, %v1533_v21, %v1532_v60  ;;  %v1614_v52 = vshrl.u32 %v1613_v63, 30 }
 0x4cb   : > { %v1864_v44 = vmul.f32 %v1448_v10, %v4271_v12  ;;  %v2712_v9 = vmul.f32 %v2292_v36, %v4271_v12  ;;  %v1537_v41 = vsel %vm4310_vm1, %v3991_v15, %v1534_v24  ;;  %v4379_v48 = vadd.f32 %v3139_v14, %v4275_v56 }
 0x4cc   : > { %3115 = vcosq.f32 %v1537_v41  ;;  %v1615_v31 = vshll.u32 %v1614_v52, 30  ;;  %v4383_v7 = vand.u32 3, %v2386_v35  ;;  %vm1554_vm10 = vcmp.lt.s32.totalorder %v4161_v0, 0 }
 0x4cd   : > { %1872 = vst [vmem:[%s4096_s13 + $0x18] sm:$0xff] %v1864_v44  ;;  %2720 = vst [vmem:[%s4096_s13 + $0x58] sm:$0xff] %v2712_v9  ;;  %3117 = vsinq.f32 %v1537_v41  ;;  %v1663_v17 = vor.u32 8388608, %v1662_v53  ;;  %v1673_v57 = vshrl.u32 %v3279_v20, %v1670_v18  ;;  %v4389_v27 = vshrl.u32 %v1667_v50, 5  ;;  %v3140_v50 = vld [vmem:[%s3454_s17 + $0x78] sm:$0xff] }
 0x4ce   : > { %v4386_v12 = vsub.s32 %v1612_v8, %v1615_v31  ;;  %v1676_v46 = vshrl.u32 %v3280_v54, %v1670_v18  ;;  %v1679_v2 = vshrl.u32 %v3281_v51, %v1670_v18  ;;  %v1682_v56 = vshrl.u32 %v3282_v4, %v1670_v18 }
 0x4cf   : > { %vm1547_vm13 = vcmp.eq.s32.totalorder %v4375_v59, 2  ;;  %v1638_v62 = vsub.s32 4, %v1614_v52  ;;  %v1672_v28 = vshll.u32 %v3278_v29, %v1669_v49  ;;  %v1681_v55 = vshll.u32 %v3281_v51, %v1669_v49 }
 0x4d0   : > { %v1618_v16 = vsub.s32 0, %v4386_v12  ;;  %vm1544_vm12 = vcmp.eq.s32.totalorder %v4375_v59, 0  ;;  %vm2389_vm15 = vcmp.eq.s32.totalorder %v4383_v7, 0  ;;  %v1675_v58 = vshll.u32 %v3279_v20, %v1669_v49 }
 0x4d1   : > { %v1678_v26 = vshll.u32 %v3280_v54, %v1669_v49  ;;  %v1684_v42 = vshll.u32 %v3282_v4, %v1669_v49  ;;  %v1685_v32 = vshrl.u32 %v3283_v39, %v1670_v18  ;;  %vm1543_vm1 = vcmp.lt.s32.totalorder %v4375_v59, 2 }
 0x4d2   : > { %vm2388_vm2 = vcmp.lt.s32.totalorder %v4383_v7, 2  ;;  %vm2392_vm0 = vcmp.eq.s32.totalorder %v4383_v7, 2  ;;  %v2879_v47 = vmin.u32 %v1618_v16, %v4386_v12  ;;  %v1674_v61 = vor.u32 %v1673_v57, %v1672_v28 }
 0x4d3   : > { %v1683_v30 = vor.u32 %v1682_v56, %v1681_v55  ;;  %vm1541_vm14 = vweird.f32 %v3991_v15  ;;  %v1677_v6 = vor.u32 %v1676_v46, %v1675_v58  ;;  %v1680_v60 = vor.u32 %v1679_v2, %v1678_v26 }
 0x4d4   : > { %v1686_v8 = vor.u32 %v1685_v32, %v1684_v42  ;;  %v4411_v13 = vadd.f32 %v3140_v50, %v4231_v19  ;;  %v1608_v43 = vadd.s32 %v4326_v11, %v4332_v33  ;;  %v1620_v35 = vclz %v2879_v47 }
 0x4d5   : > { %v1671_v49 = vshrl.u32 %v3278_v29, %v1670_v18  ;;  %v4416_v23 = vshll.u32 %v1663_v17, 8  ;;  %v1639_v3 = vsel %vm1554_vm10, %v1638_v62, %v1614_v52  ;;  %vm1687_vm3 = vcmp.lt.s32.totalorder %v4389_v27, 1 }
 0x4d6   : > { %vm1688_vm4 = vcmp.lt.s32.totalorder %v4389_v27, 2  ;;  %vm1690_vm5 = vcmp.lt.s32.totalorder %v4389_v27, 4  ;;  %v3116_v21 = vpop.eup %3115  ;;  %v2880_v19 = vadd.s32 4294967294, %v1620_v35  ;;  %vm1689_vm6 = vcmp.lt.s32.totalorder %v4389_v27, 3 }
 0x4d7   : > { %v1691_v63 = vsel %vm1687_vm3, %v1671_v49, %v1674_v61  ;;  %v1696_v11 = vsel %vm1690_vm5, %v1683_v30, 920167782  ;;  %v3118_v33 = vpop.eup %3117  ;;  %v1548_v1 = vxor.u32 2147483648, %v3116_v21  ;;  %v1695_v25 = vsel %vm1687_vm3, %v1674_v61, %v1677_v6 }
 0x4d8   : > { %v1697_v53 = vsel %vm1689_vm6, %v1680_v60, %v1696_v11  ;;  %v1700_v18 = vsel %vm1690_vm5, %v1686_v8, 1326507024  ;;  %v1545_v10 = vxor.u32 2147483648, %v3118_v33  ;;  %vm2881_vm7 = vcmp.lt.s32.totalorder %v2880_v19, 0 }
 0x4d9   : > { %v1699_v36 = vsel %vm1687_vm3, %v1677_v6, %v1680_v60  ;;  %v1701_v24 = vsel %vm1689_vm6, %v1683_v30, %v1700_v18  ;;  %v1549_v52 = vsel %vm1547_vm13, %v1548_v1, %v3118_v33  ;;  %v2394_v44 = vsel %vm2392_vm0, %v1548_v1, %v3118_v33 }
 0x4da   : > { %v1623_v9 = vsel %vm2881_vm7, 0, %v2880_v19  ;;  %v1692_v41 = vsel %vm1690_vm5, %v1680_v60, 2102212464  ;;  %v1546_v31 = vsel %vm1544_vm12, %v3116_v21, %v1545_v10  ;;  %v2391_v14 = vsel %vm2389_vm15, %v3116_v21, %v1545_v10 }
 0x4db   : > { %v1624_v17 = vsub.s32 32, %v1623_v9  ;;  %v1698_v57 = vsel %vm1688_vm4, %v1695_v25, %v1697_v53  ;;  %v1550_v46 = vsel %vm1543_vm1, %v1546_v31, %v1549_v52  ;;  %v2395_v2 = vsel %vm2388_vm2, %v2391_v14, %v2394_v44 }
 0x4dc   : > { %v1628_v56 = vsub.s32 4294967266, %v1623_v9  ;;  %v1702_v16 = vsel %vm1688_vm4, %v1699_v36, %v1701_v24  ;;  %v1551_v62 = vsel %vm1541_vm14, nan, %v1550_v46  ;;  %v2396_v28 = vsel %vm1541_vm14, nan, %v2395_v2 }
 0x4dd   : > { %v1625_v55 = vshll.u32 %v4386_v12, %v1623_v9  ;;  %v1626_v58 = vshrl.u32 %v1608_v43, %v1624_v17  ;;  %v1865_v59 = vmul.f32 %v1551_v62, %v4379_v48  ;;  %v2713_v26 = vmul.f32 %v2396_v28, %v4379_v48 }
 0x4de   : > { %v1629_v7 = vadd.s32 127, %v1628_v56  ;;  %v1761_v42 = vand.u32 2139095040, %v4411_v13  ;;  %v1693_v47 = vsel %vm1689_vm6, %v1677_v6, %v1692_v41  ;;  %vm4473_vm8 = vcmp.le.f32.partialorder %v1552_v45, 0.7853982 }
 0x4df   : > { %v1627_v32 = vor.u32 %v1626_v58, %v1625_v55  ;;  %v4461_v61 = vmul.u32.u64.low %v4416_v23, %v1702_v16  ;;  %v4462_v30 = vmul.u32.u64.high %v4416_v23, %v1702_v16, %v4461_v61  ;;  %1873 = vst [vmem:[%s4096_s13 + $0x20] sm:$0xff] %v1865_v59  ;;  %2721 = vst [vmem:[%s4096_s13 + $0x60] sm:$0xff] %v2713_v26  ;;  %v1694_v50 = vsel %vm1688_vm4, %v1691_v63, %v1693_v47 }
 0x4e0   : > { %v1630_v15 = vshll.u32 %v1629_v7, 23  ;;  %v4467_v12 = vmul.u32.u64.low %v4416_v23, %v1698_v57  ;;  %v4468_v60 = vmul.u32.u64.high %v4416_v23, %v1698_v57, %v4467_v12  ;;  %v1762_v48 = vshrl.u32 %v1761_v42, 23  ;;  %v3141_v42 = vld [vmem:[%s3454_s17 + $0x28] sm:$0xff] }
 0x4e1   : > { %v1641_v35 = vsel %vm4473_vm8, 0, %v1639_v3  ;;  %v1634_v21 = vcvt.s32.f32 %v1627_v32  ;;  %v1710_v45 = vmul.u32 %v4416_v23, %v1694_v50  ;;  %v1758_v3 = vand.u32 2147483647, %v4411_v13 }
 0x4e2   : > { %v1631_v6 = vor.u32 4788187, %v1630_v15  ;;  %v2886_v43 = vadd.s32 4294967169, %v1762_v48  ;;  %vm1712_vm9 = vc.u32 %v4462_v30, %v4467_v12  ;;  %v1713_v19 = vadd.s32 1, %v4468_v60 }
 0x4e3   : > { %v2490_v27 = vadd.s32 3, %v1641_v35  ;;  %v981_v36 = vadd.f32 %v3745_v37, %v4268_v40  ;;  %v4494_v44 = vand.u32 3, %v1641_v35  ;;  %v1765_v31 = vand.u32 8388607, %v1758_v3 }
 0x4e4   : > { %v1632_v49 = vand.u32 2147483647, %v1631_v6  ;;  %v1768_v11 = vadd.s32 1, %v2886_v43  ;;  %v1714_v1 = vsel %vm1712_vm9, %v1713_v19, %v4468_v60  ;;  %vm1644_vm15 = vweird.f32 %v4161_v0 }
 0x4e5   : > { %v1715_v63 = vadd.s32 %v1714_v1, %v1710_v45  ;;  %v4496_v9 = vand.u32 3, %v2490_v27  ;;  %v1026_v32 = vadd.f32 %v3141_v42, %v981_v36  ;;  %vm1647_vm13 = vcmp.eq.s32.totalorder %v4494_v44, 0 }
 0x4e6   : > { %v1635_v33 = vmul.f32 %v1634_v21, %v1632_v49  ;;  %vm1769_vm11 = vcmp.gt.s32.totalorder %v1768_v11, 0  ;;  %vm1650_vm12 = vcmp.eq.s32.totalorder %v4494_v44, 2  ;;  %v1711_v6 = vadd.s32 %v4467_v12, %v4462_v30 }
 0x4e7   : > { %v1770_v25 = vsel %vm1769_vm11, %v1768_v11, 0  ;;  %v1716_v10 = vadd.s32 536870912, %v1715_v63  ;;  %vm2492_vm1 = vcmp.lt.s32.totalorder %v4496_v9, 2  ;;  %vm2493_vm14 = vcmp.eq.s32.totalorder %v4496_v9, 0 }
 0x4e8   : > { %v1636_v53 = vxor.u32 2147483648, %v1635_v33  ;;  %v1772_v18 = vand.u32 31, %v1770_v25  ;;  %v4505_v17 = vshrl.u32 %v1770_v25, 5  ;;  %vm2496_vm4 = vcmp.eq.s32.totalorder %v4496_v9, 2 }
 0x4e9   : > { %v4498_v41 = vshrl.u32 %v1716_v10, 30  ;;  %vm1656_vm9 = vcmp.le.f32.partialorder %v1655_v5, 0.7853982 }
 0x4ea   : > { %v1637_v24 = vsel %vm1554_vm10, %v1636_v53, %v1635_v33  ;;  %v1773_v52 = vsub.s32 32, %v1772_v18  ;;  %v1775_v46 = vshll.u32 %v3278_v29, %v1772_v18  ;;  %v1778_v2 = vshll.u32 %v3279_v20, %v1772_v18 }
 0x4eb   : > { %v1640_v23 = vsel %vm4473_vm8, %v4161_v0, %v1637_v24  ;;  %v1718_v14 = vshll.u32 %v4498_v41, 30  ;;  %v1784_v56 = vshll.u32 %v3281_v51, %v1772_v18  ;;  %v1781_v28 = vshll.u32 %v3280_v54, %v1772_v18 }
 0x4ec   : > { %3119 = vcosq.f32 %v1640_v23  ;;  %v1776_v37 = vshrl.u32 %v3279_v20, %v1773_v52  ;;  %v1779_v40 = vshrl.u32 %v3280_v54, %v1773_v52  ;;  %v1782_v57 = vshrl.u32 %v3281_v51, %v1773_v52 }
 0x4ed   : > { %3121 = vsinq.f32 %v1640_v23  ;;  %v1785_v16 = vshrl.u32 %v3282_v4, %v1773_v52  ;;  %v4512_v62 = vsub.s32 %v1715_v63, %v1718_v14  ;;  %v1787_v55 = vshll.u32 %v3282_v4, %v1772_v18 }
 0x4ee   : > { %v1788_v58 = vshrl.u32 %v3283_v39, %v1773_v52  ;;  %v1777_v59 = vor.u32 %v1776_v37, %v1775_v46  ;;  %v1780_v26 = vor.u32 %v1779_v40, %v1778_v2  ;;  %v1783_v20 = vor.u32 %v1782_v57, %v1781_v28 }
 0x4ef   : > { %v1786_v7 = vor.u32 %v1785_v16, %v1784_v56  ;;  %v1721_v47 = vsub.s32 0, %v4512_v62  ;;  %vm1646_vm10 = vcmp.lt.s32.totalorder %v4494_v44, 2  ;;  %v1766_v54 = vor.u32 8388608, %v1765_v31 }
 0x4f0   : > { %v1789_v61 = vor.u32 %v1788_v58, %v1787_v55  ;;  %vm1790_vm2 = vcmp.lt.s32.totalorder %v4505_v17, 1  ;;  %vm1793_vm0 = vcmp.lt.s32.totalorder %v4505_v17, 4  ;;  %vm1792_vm3 = vcmp.lt.s32.totalorder %v4505_v17, 3 }
 0x4f1   : > { %v2883_v51 = vmin.u32 %v1721_v47, %v4512_v62  ;;  %v1798_v4 = vsel %vm1790_vm2, %v1777_v59, %v1780_v26  ;;  %v1799_v39 = vsel %vm1793_vm0, %v1786_v7, 920167782  ;;  %v1774_v50 = vshrl.u32 %v3278_v29, %v1773_v52 }
 0x4f2   : > { %v1800_v60 = vsel %vm1792_vm3, %v1783_v20, %v1799_v39  ;;  %v1803_v48 = vsel %vm1793_vm0, %v1789_v61, 1326507024  ;;  %vm1791_vm5 = vcmp.lt.s32.totalorder %v4505_v17, 2  ;;  %v1806_v43 = vshll.u32 %v1766_v54, 8 }
 0x4f3   : > { %v1723_v15 = vclz %v2883_v51  ;;  %v1801_v19 = vsel %vm1791_vm5, %v1798_v4, %v1800_v60  ;;  %v1802_v11 = vsel %vm1790_vm2, %v1780_v26, %v1783_v20  ;;  %v1804_v33 = vsel %vm1792_vm3, %v1786_v7, %v1803_v48 }
 0x4f4   : > { %v4548_v1 = vmul.u32.u64.low %v1806_v43, %v1801_v19  ;;  %v4549_v30 = vmul.u32.u64.high %v1806_v43, %v1801_v19, %v4548_v1  ;;  %v1795_v27 = vsel %vm1793_vm0, %v1783_v20, 2102212464  ;;  %v1794_v18 = vsel %vm1790_vm2, %v1774_v50, %v1777_v59 }
 0x4f5   : > { %v2884_v21 = vadd.s32 4294967294, %v1723_v15  ;;  %v1805_v52 = vsel %vm1791_vm5, %v1802_v11, %v1804_v33  ;;  %v1796_v40 = vsel %vm1792_vm3, %v1780_v26, %v1795_v27  ;;  %vm1657_vm8 = vcmp.lt.s32.totalorder %v4278_v34, 0 }
 0x4f6   : > { %v3120_v8 = vpop.eup %3119  ;;  %v4577_v2 = vmul.u32.u64.low %v1806_v43, %v1805_v52  ;;  %v4578_v56 = vmul.u32.u64.high %v1806_v43, %v1805_v52, %v4577_v2  ;;  %v1797_v16 = vsel %vm1791_vm5, %v1794_v18, %v1796_v40  ;;  %v1816_v0 = vadd.s32 1, %v4549_v30 }
 0x4f7   : > { %v3122_v35 = vpop.eup %3121  ;;  %v1651_v49 = vxor.u32 2147483648, %v3120_v8  ;;  %vm2885_vm6 = vcmp.lt.s32.totalorder %v2884_v21, 0  ;;  %v1813_v59 = vmul.u32 %v1806_v43, %v1797_v16  ;;  %vm1747_vm0 = vweird.f32 %v4278_v34 }
 0x4f8   : > { %v1648_v45 = vxor.u32 2147483648, %v3122_v35  ;;  %v1726_v53 = vsel %vm2885_vm6, 0, %v2884_v21  ;;  %vm1815_vm7 = vc.u32 %v4578_v56, %v4548_v1  ;;  %vm1759_vm3 = vcmp.le.f32.partialorder %v1758_v3, 0.7853982 }
 0x4f9   : > { %v1652_v29 = vsel %vm1650_vm12, %v1651_v49, %v3122_v35  ;;  %v2498_v12 = vsel %vm2496_vm4, %v1651_v49, %v3122_v35  ;;  %v1727_v24 = vsub.s32 32, %v1726_v53  ;;  %v1731_v37 = vsub.s32 4294967266, %v1726_v53  ;;  %v854_v49 = vpop.permute.xlu1 %853 }
 0x4fa   : > { %v1649_v63 = vsel %vm1647_vm13, %v3120_v8, %v1648_v45  ;;  %v2495_v25 = vsel %vm2493_vm14, %v3120_v8, %v1648_v45  ;;  %v1728_v9 = vshll.u32 %v4512_v62, %v1726_v53  ;;  %v1817_v62 = vsel %vm1815_vm7, %v1816_v0, %v4549_v30 }
 0x4fb   : > { %v1653_v10 = vsel %vm1646_vm10, %v1649_v63, %v1652_v29  ;;  %v2499_v36 = vsel %vm2492_vm1, %v2495_v25, %v2498_v12  ;;  %v1729_v57 = vshrl.u32 %v1711_v6, %v1727_v24  ;;  %v1732_v46 = vadd.s32 127, %v1731_v37 }
 0x4fc   : > { %v1654_v23 = vsel %vm1644_vm15, nan, %v1653_v10  ;;  %v2500_v31 = vsel %vm1644_vm15, nan, %v2499_v36  ;;  %v1818_v42 = vadd.s32 %v1817_v62, %v1813_v59  ;;  %v985_v21 = vadd.f32 %v3747_v22, %v854_v49  ;;  %v3142_v36 = vld [vmem:[%s3454_s17 + $0x30] sm:$0xff] }
 0x4fd   : > { %v1866_v44 = vmul.f32 %v1654_v23, %v1026_v32  ;;  %v2714_v14 = vmul.f32 %v2500_v31, %v1026_v32  ;;  %v1730_v28 = vor.u32 %v1729_v57, %v1728_v9  ;;  %v1733_v55 = vshll.u32 %v1732_v46, 23 }
 0x4fe   : > { %v1741_v32 = vsub.s32 4, %v4498_v41  ;;  %v1819_v20 = vadd.s32 536870912, %v1818_v42  ;;  %v1814_v30 = vadd.s32 %v4548_v1, %v4578_v56  ;;  %v1027_v24 = vadd.f32 %v3142_v36, %v985_v21 }
 0x4ff   : > { %1874 = vst [vmem:[%s4096_s13 + $0x28] sm:$0xff] %v1866_v44  ;;  %2722 = vst [vmem:[%s4096_s13 + $0x68] sm:$0xff] %v2714_v14  ;;  %v1734_v58 = vor.u32 4788187, %v1733_v55  ;;  %v1737_v7 = vcvt.s32.f32 %v1730_v28  ;;  %vm1760_vm14 = vcmp.lt.s32.totalorder %v4411_v13, 0 }
 0x500   : > { %v4590_v61 = vshrl.u32 %v1819_v20, 30  ;;  %v1742_v54 = vsel %vm1657_vm8, %v1741_v32, %v4498_v41 }
 0x501   : > { %v1735_v26 = vand.u32 2147483647, %v1734_v58  ;;  %v1744_v15 = vsel %vm1656_vm9, 0, %v1742_v54  ;;  %v3143_v54 = vld [vmem:[%s3454_s17 + $0x38] sm:$0xff]  ;;  %s4629_s17 = scalar_lea.sflag [#allocation4], %s299_s10 }
 0x502   : > { %v1821_v4 = vshll.u32 %v4590_v61, 30  ;;  %v2594_v8 = vadd.s32 3, %v1744_v15  ;;  %v1748_v50 = vand.u32 3, %v1744_v15  ;;  %v1844_v56 = vsub.s32 4, %v4590_v61 }
 0x503   : > { %v1738_v47 = vmul.f32 %v1737_v7, %v1735_v26 }
 0x504   : > { %v1822_v60 = vsub.s32 %v1818_v42, %v1821_v4  ;;  %v2595_v35 = vand.u32 3, %v2594_v8  ;;  %vm1749_vm11 = vcmp.lt.s32.totalorder %v1748_v50, 2  ;;  %vm1750_vm10 = vcmp.eq.s32.totalorder %v1748_v50, 0 }
 0x505   : > { %v1739_v17 = vxor.u32 2147483648, %v1738_v47  ;;  %vm1753_vm13 = vcmp.eq.s32.totalorder %v1748_v50, 2  ;;  %v1845_v0 = vsel %vm1760_vm14, %v1844_v56, %v4590_v61  ;;  %v987_v42 = vadd.f32 %v3749_v38, %v854_v49 }
 0x506   : > { %v1824_v48 = vsub.s32 0, %v1822_v60  ;;  %vm2596_vm15 = vcmp.lt.s32.totalorder %v2595_v35, 2  ;;  %vm2600_vm1 = vcmp.eq.s32.totalorder %v2595_v35, 2  ;;  %vm2597_vm2 = vcmp.eq.s32.totalorder %v2595_v35, 0 }
 0x507   : > { %v1740_v51 = vsel %vm1657_vm8, %v1739_v17, %v1738_v47  ;;  %v1847_v55 = vsel %vm1759_vm3, 0, %v1845_v0  ;;  %v1028_v38 = vadd.f32 %v3143_v54, %v987_v42 }
 0x508   : > { %v1743_v39 = vsel %vm1656_vm9, %v4278_v34, %v1740_v51  ;;  %v2887_v6 = vmin.u32 %v1824_v48, %v1822_v60  ;;  %v2698_v58 = vadd.s32 3, %v1847_v55  ;;  %v1851_v59 = vand.u32 3, %v1847_v55 }
 0x509   : > { %3123 = vcosq.f32 %v1743_v39 }
 0x50a   : > { %3125 = vsinq.f32 %v1743_v39  ;;  %v1826_v43 = vclz %v2887_v6  ;;  %v2699_v62 = vand.u32 3, %v2698_v58  ;;  %vm1856_vm4 = vcmp.eq.s32.totalorder %v1851_v59, 2 }
 0x50b   : > { %vm1853_vm6 = vcmp.eq.s32.totalorder %v1851_v59, 0  ;;  %vm1852_vm8 = vcmp.lt.s32.totalorder %v1851_v59, 2 }
 0x50c   : > { %v2888_v41 = vadd.s32 4294967294, %v1826_v43  ;;  %vm2704_vm5 = vcmp.eq.s32.totalorder %v2699_v62, 2  ;;  %vm2701_vm7 = vcmp.eq.s32.totalorder %v2699_v62, 0  ;;  %vm2700_vm9 = vcmp.lt.s32.totalorder %v2699_v62, 2 }
 0x50e   : > { %vm2889_vm12 = vcmp.lt.s32.totalorder %v2888_v41, 0 }
 0x50f   : > { %v1829_v45 = vsel %vm2889_vm12, 0, %v2888_v41 }
 0x510   : > { %v1830_v29 = vsub.s32 32, %v1829_v45  ;;  %v1834_v12 = vsub.s32 4294967266, %v1829_v45  ;;  %v1831_v63 = vshll.u32 %v1822_v60, %v1829_v45 }
 0x512   : > { %v1832_v18 = vshrl.u32 %v1814_v30, %v1830_v29  ;;  %v1835_v10 = vadd.s32 127, %v1834_v12 }
 0x513   : > { %v3124_v5 = vpop.eup %3123 }
 0x514   : > { %v3126_v19 = vpop.eup %3125  ;;  %v1754_v11 = vxor.u32 2147483648, %v3124_v5  ;;  %v1833_v37 = vor.u32 %v1832_v18, %v1831_v63  ;;  %v1836_v40 = vshll.u32 %v1835_v10, 23 }
 0x515   : > { %v1751_v33 = vxor.u32 2147483648, %v3126_v19 }
 0x516   : > { %v1755_v27 = vsel %vm1753_vm13, %v1754_v11, %v3126_v19  ;;  %v2602_v22 = vsel %vm2600_vm1, %v1754_v11, %v3126_v19  ;;  %v1837_v57 = vor.u32 4788187, %v1836_v40  ;;  %v1840_v46 = vcvt.s32.f32 %v1833_v37 }
 0x517   : > { %v1752_v25 = vsel %vm1750_vm10, %v3124_v5, %v1751_v33  ;;  %v2599_v53 = vsel %vm2597_vm2, %v3124_v5, %v1751_v33 }
 0x518   : > { %v1756_v52 = vsel %vm1749_vm11, %v1752_v25, %v1755_v27  ;;  %v2603_v1 = vsel %vm2596_vm15, %v2599_v53, %v2602_v22  ;;  %v1838_v9 = vand.u32 2147483647, %v1837_v57  ;;  %vm1850_vm11 = vweird.f32 %v4411_v13 }
 0x519   : > { %v1757_v23 = vsel %vm1747_vm0, nan, %v1756_v52  ;;  %v2604_v31 = vsel %vm1747_vm0, nan, %v2603_v1 }
 0x51a   : > { %v1867_v44 = vmul.f32 %v1757_v23, %v1027_v24  ;;  %v2715_v14 = vmul.f32 %v2604_v31, %v1027_v24  ;;  %v1841_v2 = vmul.f32 %v1840_v46, %v1838_v9 }
 0x51c   : > { %1875 = vst [vmem:[%s4096_s13 + $0x30] sm:$0xff] %v1867_v44  ;;  %2723 = vst [vmem:[%s4096_s13 + $0x70] sm:$0xff] %v2715_v14  ;;  %v1842_v16 = vxor.u32 2147483648, %v1841_v2 }
 0x51e   : > { %v1843_v34 = vsel %vm1760_vm14, %v1842_v16, %v1841_v2 }
 0x51f   : > { %v1846_v28 = vsel %vm1759_vm3, %v4411_v13, %v1843_v34 }
 0x520   : > { %3127 = vcosq.f32 %v1846_v28 }
 0x521   : > { %3129 = vsinq.f32 %v1846_v28 }
 0x52a   : > { %v3128_v26 = vpop.eup %3127 }
 0x52b   : > { %v3130_v7 = vpop.eup %3129  ;;  %v1857_v32 = vxor.u32 2147483648, %v3128_v26 }
 0x52c   : > { %v1854_v3 = vxor.u32 2147483648, %v3130_v7 }
 0x52d   : > { %v1858_v47 = vsel %vm1856_vm4, %v1857_v32, %v3130_v7  ;;  %v2706_v20 = vsel %vm2704_vm5, %v1857_v32, %v3130_v7 }
 0x52e   : > { %v1855_v17 = vsel %vm1853_vm6, %v3128_v26, %v1854_v3  ;;  %v2703_v61 = vsel %vm2701_vm7, %v3128_v26, %v1854_v3 }
 0x52f   : > { %v1859_v51 = vsel %vm1852_vm8, %v1855_v17, %v1858_v47  ;;  %v2707_v4 = vsel %vm2700_vm9, %v2703_v61, %v2706_v20 }
 0x530   : > { %v1860_v39 = vsel %vm1850_vm11, nan, %v1859_v51  ;;  %v2708_v15 = vsel %vm1850_vm11, nan, %v2707_v4 }
 0x531   : > { %v1868_v60 = vmul.f32 %v1860_v39, %v1028_v38  ;;  %v2716_v48 = vmul.f32 %v2708_v15, %v1028_v38 }
 0x533   : > { %1876 = vst [vmem:[%s4096_s13 + $0x38] sm:$0xff] %v1868_v60  ;;  %2724 = vst [vmem:[%s4096_s13 + $0x78] sm:$0xff] %v2716_v48 }
 0x534   : > { %3213 = shalt.err (!%p3210_p11)
}
 0x535   : > { %s3214_s8 = scalar_lea.hbm %s4621_s28, 2048  ;;  %s3218_s10 = scalar_lea.hbm %s4677_s7, 4096 }
 0x536   : > { %p3215_p13 = scmp.ne.s32.totalorder %s4621_s28, %s3214_s8  ;;  %p3219_p6 = scmp.lt.u32.totalorder %s4621_s28, %s4677_s7 }
 0x537   : > { %p3220_p9 = scmp.lt.u32.totalorder %s3218_s10, %s3214_s8  ;;  %p3222_p12 = scmp.lt.u32.totalorder %s3214_s8, %s4621_s28 }
 0x538   : > { %p3216_p5 = pnand %p3215_p13, %p4703_p1 }
 0x539   : > { %p3221_p10 = por %p3220_p9, %p3219_p6 }
 0x53a   : > { %p3217_p0 = pneg %p3216_p5 }
 0x53b   : > { %p3223_p2 = por %p3222_p12, %p3221_p10 }
 0x53d   : > { %p3224_p3 = pnand %p3223_p2, %p3217_p0 }
 0x53f   : > { %3227 = shalt.err (!%p3224_p3)
}
 0x540   : > { %s3285_s16 = smov 256   ;;  %s3286_s14 = smov 16  }
 0x541   : > { %3001 = dma.vmem_to_hbm [thread:$0]  (%p4703_p1), %s4623_s18, 2048, %s4621_s28, %s4629_s17, %s3285_s16, %s3285_s16, %s3286_s14  }
 0x542 PF: > { %p3018_p4 = scmp.ge.s32.totalorder %s3270_s27, 2  ;;  %s2754_s20 = sand.u32 1, %s3258_s24  }
 0x543   : > { %p4704_p7 = scmp.ne.s32.totalorder %s4683_s12, 0  ;;  %s2755_s21 = scalar_lea.sflag [#allocation4], %s2754_s20 }
 0x545   : > { %p3011_p8 = pnand %p3018_p4, %p4704_p7 }
 0x547   : > { %3253 = dma.done.wait (!%p3011_p8), %s2755_s21, 2048  }
 0x548   : > { %3255 = vsyncadd (!%p3011_p8), %s2755_s21, 4294965248  ;;  %s4705_s22 = sld [smem:[#allocation11_spill]]  ;;  %p19_p11 = scmp.ge.s32.totalorder %s3352_s30, 4  }
 0x549   : > { %s4706_s24 = smov %s3262_s25  ;;  %s4707_s25 = smov %s3266_s26 }
 0x54a   : > { %s4709_s27 = smov %s3352_s30  ;;  %21 = sbr.rel (!%p19_p11) target bundleno = 5 (0x5), region = 92 }
 0x54e   : > { %s4708_s26 = smov %s4705_s22 }
 0x551   :  { %2760 = vsyncpa [#allocation3], 1 }
 0x552   :  { %2762 = vsyncpa [#allocation3 + $0x1], 1 }
 0x553   :  { %2763 = vsyncpa [#allocation6], 1 }
 0x554   :  { %2764 = vsyncpa [#allocation4], 1 }
 0x555   :  { %2766 = vsyncpa [#allocation4 + $0x1], 1 }

</bundles_post_ra>
